<compile_context>
chip_gen: v7x
topology: tpu7x:2x2x1
jax: 0.10.0
libtpu: 0.0.40
codegen_flags: <defaults>
</compile_context>

<pallas_src>
import functools

import jax
import jax.numpy as jnp
from jax import lax
from jax.experimental import pallas as pl
from jax.experimental.pallas import tpu as pltpu


# ----------------------------------------------------------------------------
# Fused conv-stage kernel (whole batch folded into one MXU contraction):
#   [optional input affine + ReLU]  ->  zero-border halo in VMEM  ->
#   im2col single matmul  ->  + bias  ->  y (flat), batch mean, batch var
# ----------------------------------------------------------------------------
def conv_stage_kernel(x_ref, w_ref, b_ref, scale_ref, shift_ref,
                      y_ref, mean_ref, var_ref, xp_ref, *,
                      N, H, W, apply_input_affine, compute_dtype):
    cin = x_ref.shape[-1]

    # ---- optional folded BN(prev stage) + ReLU on the conv input read ------
    a = x_ref[...]                                          # (N, H, W, Cin)
    if apply_input_affine:
        scale = scale_ref[...].reshape(1, 1, 1, cin)        # f32
        shift = shift_ref[...].reshape(1, 1, 1, cin)
        a = jnp.maximum(a.astype(jnp.float32) * scale + shift, 0.0)
    a = a.astype(compute_dtype)

    # ---- "same" padding halo in VMEM scratch.  Zero ONLY the four 1-pixel
    #      border strips; the interior is simply overwritten (no per-step
    #      full-scratch zero fill -> no wasted vector-store cycles). ---------
    zrow = jnp.zeros((N, 1, W + 2, cin), compute_dtype)
    zcol = jnp.zeros((N, H, 1, cin), compute_dtype)
    xp_ref[:, pl.ds(0, 1), :, :] = zrow
    xp_ref[:, pl.ds(H + 1, 1), :, :] = zrow
    xp_ref[:, pl.ds(1, H), pl.ds(0, 1), :] = zcol
    xp_ref[:, pl.ds(1, H), pl.ds(W + 1, 1), :] = zcol
    xp_ref[:, pl.ds(1, H), pl.ds(1, W), :] = a

    # ---- im2col: 9 shifted taps concatenated on the channel axis -> ONE
    #      MXU contraction with K = 9*Cin (what fills K at small Cin).
    #      NOTE(perf): for layers with Cin >= 128 switch to the shifted-
    #      accumulation form  acc += tap @ w[dy, dx]  instead: the per-tap K
    #      already fills an MXU pass and the 9x concat copy is wasted. -------
    taps = [xp_ref[:, pl.ds(dy, H), pl.ds(dx, W), :]
            for dy in range(3) for dx in range(3)]
    patches = jnp.concatenate(taps, axis=-1).reshape(N * H * W, 9 * cin)

    acc = jnp.dot(patches, w_ref[...], preferred_element_type=jnp.float32)
    acc = acc + b_ref[...]                                  # (N*H*W, Cout) f32

    # ---- BatchNorm batch statistics from the f32 accumulator (centered
    #      two-pass inside VMEM: no E[x^2]-E[x]^2 cancellation, no HBM
    #      re-read of y). ----------------------------------------------------
    inv_m = 1.0 / (N * H * W)
    mean = jnp.sum(acc, axis=0, keepdims=True) * inv_m      # (1, Cout)
    d = acc - mean
    mean_ref[...] = mean
    var_ref[...] = jnp.sum(d * d, axis=0, keepdims=True) * inv_m

    # Flat matmul-layout output; the (H, W) split / NHWC bookkeeping happens
    # in the wrapper where XLA fuses it with the next stage / epilogue.
    y_ref[...] = acc.astype(y_ref.dtype)


def _compiler_params():
    # Generation-aware VMEM budget: ~3/4 of physical capacity, capped at
    # 96 MiB (=> ~48 MiB on v7x, up to ~96 MiB on v5e/v6e) instead of a
    # hard-coded 32 MiB.  Falls back to the compiler default if the query
    # is unavailable.
    kwargs = dict(dimension_semantics=("arbitrary",))
    try:
        cap = pltpu.get_tpu_info().vmem_capacity_bytes
        kwargs["vmem_limit_bytes"] = min(int(cap) * 3 // 4, 96 * 1024 * 1024)
    except Exception:
        pass
    return pltpu.CompilerParams(**kwargs)


def conv_stage(x_nhwc, w, b, scale=None, shift=None, *,
               out_dtype=jnp.bfloat16, compute_dtype=jnp.bfloat16):
    """One fused stage: [optional affine+ReLU] -> conv3x3("same") + bias.

    Returns (y_flat (N*H*W, Cout), batch_mean (1, Cout), batch_var (1, Cout)).
    """
    N, H, W, Cin = x_nhwc.shape
    Cout = w.shape[-1]

    # im2col weight layout (3,3,Cin,Cout) -> (9*Cin, Cout); row index
    # (dy*3+dx)*Cin+ci matches the tap concat order in the kernel.
    w2d = w.reshape(9 * Cin, Cout).astype(compute_dtype)
    b2 = b.reshape(1, Cout).astype(jnp.float32)

    fuse = scale is not None
    if not fuse:
        scale = jnp.ones((Cin,), jnp.float32)
        shift = jnp.zeros((Cin,), jnp.float32)
    sc = scale.reshape(1, Cin).astype(jnp.float32)
    sh = shift.reshape(1, Cin).astype(jnp.float32)

    kernel = functools.partial(conv_stage_kernel, N=N, H=H, W=W,
                               apply_input_affine=fuse,
                               compute_dtype=compute_dtype)

    # NOTE(perf): at these toy sizes the whole pooled batch is one grid step,
    # folding N into the matmul M dim (M = N*H*W = 128 here).  For real UNet
    # shapes (H=W>=128, Cin>=64) add a spatial row-strip grid axis (8-32
    # output rows per step, 2-row halo) marked "parallel" so both v7x
    # TensorCores stay busy and the bf16 patches/acc stay well under the
    # per-generation VMEM budget; the in-kernel math is unchanged.
    return pl.pallas_call(
        kernel,
        out_shape=(
            jax.ShapeDtypeStruct((N * H * W, Cout), out_dtype),
            jax.ShapeDtypeStruct((1, Cout), jnp.float32),
            jax.ShapeDtypeStruct((1, Cout), jnp.float32),
        ),
        grid_spec=pltpu.PrefetchScalarGridSpec(
            num_scalar_prefetch=0,
            grid=(1,),
            in_specs=[
                pl.BlockSpec((N, H, W, Cin), lambda i: (0, 0, 0, 0)),
                pl.BlockSpec((9 * Cin, Cout), lambda i: (0, 0)),
                pl.BlockSpec((1, Cout), lambda i: (0, 0)),
                pl.BlockSpec((1, Cin), lambda i: (0, 0)),
                pl.BlockSpec((1, Cin), lambda i: (0, 0)),
            ],
            out_specs=(
                pl.BlockSpec((N * H * W, Cout), lambda i: (0, 0)),
                pl.BlockSpec((1, Cout), lambda i: (0, 0)),
                pl.BlockSpec((1, Cout), lambda i: (0, 0)),
            ),
            scratch_shapes=[pltpu.VMEM((N, H + 2, W + 2, Cin), compute_dtype)],
        ),
        compiler_params=_compiler_params(),
    )(x_nhwc.astype(compute_dtype), w2d, b2, sc, sh)


# ----------------------------------------------------------------------------
# Down wrapper: MaxPool2d(2) then (conv => BN => ReLU) * 2.  NCHW in/out.
# ----------------------------------------------------------------------------
def down(x_nchw, params, eps=1e-5, compute_dtype=jnp.bfloat16):
    N, Cin, H, W = x_nchw.shape
    assert H % 2 == 0 and W % 2 == 0, "MaxPool2d(2) expects even H, W"
    Hp, Wp = H // 2, W // 2

    # MaxPool2d(2) on the NCHW input (fused XLA reduce); only the 4x smaller
    # pooled activation is transposed to NHWC (channels on the lane axis) and
    # cast to the compute dtype for the kernel read.
    # TODO(synk): on v5e/v6e fold the 2x2 max + NCHW->NHWC relayout into the
    # stage-1 kernel's input read to save one HBM round trip of the pooled
    # activation.
    xp = jnp.max(x_nchw.reshape(N, Cin, Hp, 2, Wp, 2), axis=(3, 5))
    x = jnp.transpose(xp, (0, 2, 3, 1))                     # (N, Hp, Wp, Cin)

    # Stage 1: conv1 + bias; batch mean/var come straight from the kernel.
    y1_flat, mean1, var1 = conv_stage(x, params["w1"], params["b1"],
                                      out_dtype=compute_dtype,
                                      compute_dtype=compute_dtype)
    scale1 = params["gamma1"] / jnp.sqrt(var1[0] + eps)
    shift1 = params["beta1"] - mean1[0] * scale1
    y1 = y1_flat.reshape(N, Hp, Wp, -1)                     # metadata-only reshape

    # Stage 2: BN1-affine + ReLU fused into the conv2 input read, conv2+bias.
    # Final-stage output kept in f32 (it only feeds the elementwise epilogue).
    y2_flat, mean2, var2 = conv_stage(y1, params["w2"], params["b2"],
                                      scale=scale1, shift=shift1,
                                      out_dtype=jnp.float32,
                                      compute_dtype=compute_dtype)
    scale2 = params["gamma2"] / jnp.sqrt(var2[0] + eps)
    shift2 = params["beta2"] - mean2[0] * scale2

    # Final BN2 + ReLU: pure elementwise, left to XLA fusion (full VPU width),
    # fused with the (Hp, Wp) split and the NHWC -> NCHW boundary transpose.
    y2 = y2_flat.reshape(N, Hp, Wp, -1)
    out = jnp.maximum(y2 * scale2.reshape(1, 1, 1, -1)
                      + shift2.reshape(1, 1, 1, -1), 0.0)
    return jnp.transpose(out, (0, 3, 1, 2))


def init_params(key, in_channels, out_channels, mid_channels=None):
    if not mid_channels:
        mid_channels = out_channels
    k1, k2, k3, k4 = jax.random.split(key, 4)
    return {
        "w1": 0.1 * jax.random.normal(k1, (3, 3, in_channels, mid_channels),
                                      jnp.float32),
        "b1": 0.1 * jax.random.normal(k2, (mid_channels,), jnp.float32),
        "gamma1": jnp.ones((mid_channels,), jnp.float32),
        "beta1": jnp.zeros((mid_channels,), jnp.float32),
        "w2": 0.1 * jax.random.normal(k3, (3, 3, mid_channels, out_channels),
                                      jnp.float32),
        "b2": 0.1 * jax.random.normal(k4, (out_channels,), jnp.float32),
        "gamma2": jnp.ones((out_channels,), jnp.float32),
        "beta2": jnp.zeros((out_channels,), jnp.float32),
    }


# ----------------------------------------------------------------------------
# Pure-JAX reference (same math, f32) for the correctness check.
# ----------------------------------------------------------------------------
def down_ref(x_nchw, params, eps=1e-5):
    def conv(x, w, b):                                      # NHWC, HWIO
        y = lax.conv_general_dilated(
            x, w, window_strides=(1, 1), padding="SAME",
            dimension_numbers=("NHWC", "HWIO", "NHWC"))
        return y + b.reshape(1, 1, 1, -1)

    def bn_relu(y, g, bta):
        m = jnp.mean(y, axis=(0, 1, 2))
        v = jnp.var(y, axis=(0, 1, 2))                      # biased, like PyTorch BN
        return jnp.maximum((y - m) / jnp.sqrt(v + eps) * g + bta, 0.0)

    x = jnp.transpose(x_nchw, (0, 2, 3, 1))
    x = lax.reduce_window(x, -jnp.inf, lax.max,
                          (1, 2, 2, 1), (1, 2, 2, 1), "VALID")
    y = bn_relu(conv(x, params["w1"], params["b1"]),
                params["gamma1"], params["beta1"])
    y = bn_relu(conv(y, params["w2"], params["b2"]),
                params["gamma2"], params["beta2"])
    return jnp.transpose(y, (0, 3, 1, 2))


if __name__ == "__main__":
    key = jax.random.PRNGKey(0)
    kx, kp = jax.random.split(key)

    N, Cin, H, W = 2, 4, 16, 16
    Cout = 8
    x = jax.random.normal(kx, (N, Cin, H, W), jnp.float32)
    params = init_params(kp, Cin, Cout)

    ref = jax.block_until_ready(down_ref(x, params))

    # 1) Exact-math check: same kernel, f32 operands -> tight tolerance.
    out_f32 = jax.block_until_ready(down(x, params, compute_dtype=jnp.float32))
    assert out_f32.shape == (N, Cout, H // 2, W // 2), out_f32.shape
    err32 = float(jnp.max(jnp.abs(out_f32 - ref)))
    assert jnp.allclose(out_f32, ref, atol=1e-3, rtol=1e-3), err32

    # 2) Fast path: bf16 conv operands with f32 accumulation -> ~0.4% operand
    #    rounding on the pre-BN activations; 3e-2 comfortably covers it at
    #    these O(1) magnitudes.
    out = jax.block_until_ready(down(x, params))
    assert out.shape == (N, Cout, H // 2, W // 2), out.shape
    err_bf16 = float(jnp.max(jnp.abs(out - ref)))
    assert jnp.allclose(out, ref, atol=3e-2, rtol=3e-2), err_bf16

    print("KERNEL_OK")
</pallas_src>

<mosaic_0001>
module attributes {stable_mosaic.version = 11 : i64} {
  func.func @conv_stage_kernel(%arg0: i32, %arg1: memref<2x8x8x4xf32, #tpu.memory_space<vmem>>, %arg2: memref<36x8xf32, #tpu.memory_space<vmem>>, %arg3: memref<1x8xf32, #tpu.memory_space<vmem>>, %arg4: memref<1x4xf32, #tpu.memory_space<vmem>>, %arg5: memref<1x4xf32, #tpu.memory_space<vmem>>, %arg6: memref<128x8xf32, #tpu.memory_space<vmem>>, %arg7: memref<1x8xf32, #tpu.memory_space<vmem>>, %arg8: memref<1x8xf32, #tpu.memory_space<vmem>>, %arg9: memref<2x10x10x4xf32, #tpu.memory_space<vmem>>) attributes {dimension_semantics = [#tpu.dimension_semantics<arbitrary>], iteration_bounds = array<i64: 1>, scalar_prefetch = 0 : i64, scratch_operands = 1 : i64, tpu.core_type = #tpu.core_type<tc>, window_params = [{pipeline_mode = #tpu.pipeline_mode<synchronous>, transform_indices = @transform_0, window_bounds = array<i64: 2, 8, 8, 4>}, {pipeline_mode = #tpu.pipeline_mode<synchronous>, transform_indices = @transform_1, window_bounds = array<i64: 36, 8>}, {pipeline_mode = #tpu.pipeline_mode<synchronous>, transform_indices = @transform_2, window_bounds = array<i64: 1, 8>}, {pipeline_mode = #tpu.pipeline_mode<synchronous>, transform_indices = @transform_3, window_bounds = array<i64: 1, 4>}, {pipeline_mode = #tpu.pipeline_mode<synchronous>, transform_indices = @transform_4, window_bounds = array<i64: 1, 4>}, {pipeline_mode = #tpu.pipeline_mode<synchronous>, transform_indices = @transform_5, window_bounds = array<i64: 128, 8>}, {pipeline_mode = #tpu.pipeline_mode<synchronous>, transform_indices = @transform_6, window_bounds = array<i64: 1, 8>}, {pipeline_mode = #tpu.pipeline_mode<synchronous>, transform_indices = @transform_7, window_bounds = array<i64: 1, 8>}]} {
    %c0 = arith.constant 0 : index
    %c0_0 = arith.constant 0 : index
    %c0_1 = arith.constant 0 : index
    %c0_2 = arith.constant 0 : index
    %0 = vector.load %arg1[%c0, %c0_0, %c0_1, %c0_2] : memref<2x8x8x4xf32, #tpu.memory_space<vmem>>, vector<2x8x8x4xf32>
    %cst = arith.constant 0.000000e+00 : f32
    %1 = vector.broadcast %cst : f32 to vector<2x1x10x4xf32>
    %cst_3 = arith.constant 0.000000e+00 : f32
    %2 = vector.broadcast %cst_3 : f32 to vector<2x8x1x4xf32>
    %c0_4 = arith.constant 0 : index
    %c0_5 = arith.constant 0 : index
    %c0_6 = arith.constant 0 : index
    %c0_7 = arith.constant 0 : index
    %3 = vector.load %arg9[%c0_4, %c0_5, %c0_6, %c0_7] : memref<2x10x10x4xf32, #tpu.memory_space<vmem>>, vector<2x1x10x4xf32>
    tpu.vector_store %arg9[%c0_4, %c0_5, %c0_6, %c0_7], %1 {strides = array<i32>} : memref<2x10x10x4xf32, #tpu.memory_space<vmem>>, vector<2x1x10x4xf32>,
    %c0_8 = arith.constant 0 : index
    %c9 = arith.constant 9 : index
    %c0_9 = arith.constant 0 : index
    %c0_10 = arith.constant 0 : index
    %4 = vector.load %arg9[%c0_8, %c9, %c0_9, %c0_10] : memref<2x10x10x4xf32, #tpu.memory_space<vmem>>, vector<2x1x10x4xf32>
    tpu.vector_store %arg9[%c0_8, %c9, %c0_9, %c0_10], %1 {strides = array<i32>} : memref<2x10x10x4xf32, #tpu.memory_space<vmem>>, vector<2x1x10x4xf32>,
    %c0_11 = arith.constant 0 : index
    %c1 = arith.constant 1 : index
    %c0_12 = arith.constant 0 : index
    %c0_13 = arith.constant 0 : index
    %5 = vector.load %arg9[%c0_11, %c1, %c0_12, %c0_13] : memref<2x10x10x4xf32, #tpu.memory_space<vmem>>, vector<2x8x1x4xf32>
    tpu.vector_store %arg9[%c0_11, %c1, %c0_12, %c0_13], %2 {strides = array<i32>} : memref<2x10x10x4xf32, #tpu.memory_space<vmem>>, vector<2x8x1x4xf32>,
    %c0_14 = arith.constant 0 : index
    %c1_15 = arith.constant 1 : index
    %c9_16 = arith.constant 9 : index
    %c0_17 = arith.constant 0 : index
    %6 = vector.load %arg9[%c0_14, %c1_15, %c9_16, %c0_17] : memref<2x10x10x4xf32, #tpu.memory_space<vmem>>, vector<2x8x1x4xf32>
    tpu.vector_store %arg9[%c0_14, %c1_15, %c9_16, %c0_17], %2 {strides = array<i32>} : memref<2x10x10x4xf32, #tpu.memory_space<vmem>>, vector<2x8x1x4xf32>,
    %c0_18 = arith.constant 0 : index
    %c1_19 = arith.constant 1 : index
    %c1_20 = arith.constant 1 : index
    %c0_21 = arith.constant 0 : index
    %7 = vector.load %arg9[%c0_18, %c1_19, %c1_20, %c0_21] : memref<2x10x10x4xf32, #tpu.memory_space<vmem>>, vector<2x8x8x4xf32>
    tpu.vector_store %arg9[%c0_18, %c1_19, %c1_20, %c0_21], %0 {strides = array<i32>} : memref<2x10x10x4xf32, #tpu.memory_space<vmem>>, vector<2x8x8x4xf32>,
    %c0_22 = arith.constant 0 : index
    %c0_23 = arith.constant 0 : index
    %c0_24 = arith.constant 0 : index
    %c0_25 = arith.constant 0 : index
    %8 = vector.load %arg9[%c0_22, %c0_23, %c0_24, %c0_25] : memref<2x10x10x4xf32, #tpu.memory_space<vmem>>, vector<2x8x8x4xf32>
    %c0_26 = arith.constant 0 : index
    %c0_27 = arith.constant 0 : index
    %c1_28 = arith.constant 1 : index
    %c0_29 = arith.constant 0 : index
    %9 = vector.load %arg9[%c0_26, %c0_27, %c1_28, %c0_29] : memref<2x10x10x4xf32, #tpu.memory_space<vmem>>, vector<2x8x8x4xf32>
    %c0_30 = arith.constant 0 : index
    %c0_31 = arith.constant 0 : index
    %c2 = arith.constant 2 : index
    %c0_32 = arith.constant 0 : index
    %10 = vector.load %arg9[%c0_30, %c0_31, %c2, %c0_32] : memref<2x10x10x4xf32, #tpu.memory_space<vmem>>, vector<2x8x8x4xf32>
    %c0_33 = arith.constant 0 : index
    %c1_34 = arith.constant 1 : index
    %c0_35 = arith.constant 0 : index
    %c0_36 = arith.constant 0 : index
    %11 = vector.load %arg9[%c0_33, %c1_34, %c0_35, %c0_36] : memref<2x10x10x4xf32, #tpu.memory_space<vmem>>, vector<2x8x8x4xf32>
    %c0_37 = arith.constant 0 : index
    %c1_38 = arith.constant 1 : index
    %c1_39 = arith.constant 1 : index
    %c0_40 = arith.constant 0 : index
    %12 = vector.load %arg9[%c0_37, %c1_38, %c1_39, %c0_40] : memref<2x10x10x4xf32, #tpu.memory_space<vmem>>, vector<2x8x8x4xf32>
    %c0_41 = arith.constant 0 : index
    %c1_42 = arith.constant 1 : index
    %c2_43 = arith.constant 2 : index
    %c0_44 = arith.constant 0 : index
    %13 = vector.load %arg9[%c0_41, %c1_42, %c2_43, %c0_44] : memref<2x10x10x4xf32, #tpu.memory_space<vmem>>, vector<2x8x8x4xf32>
    %c0_45 = arith.constant 0 : index
    %c2_46 = arith.constant 2 : index
    %c0_47 = arith.constant 0 : index
    %c0_48 = arith.constant 0 : index
    %14 = vector.load %arg9[%c0_45, %c2_46, %c0_47, %c0_48] : memref<2x10x10x4xf32, #tpu.memory_space<vmem>>, vector<2x8x8x4xf32>
    %c0_49 = arith.constant 0 : index
    %c2_50 = arith.constant 2 : index
    %c1_51 = arith.constant 1 : index
    %c0_52 = arith.constant 0 : index
    %15 = vector.load %arg9[%c0_49, %c2_50, %c1_51, %c0_52] : memref<2x10x10x4xf32, #tpu.memory_space<vmem>>, vector<2x8x8x4xf32>
    %c0_53 = arith.constant 0 : index
    %c2_54 = arith.constant 2 : index
    %c2_55 = arith.constant 2 : index
    %c0_56 = arith.constant 0 : index
    %16 = vector.load %arg9[%c0_53, %c2_54, %c2_55, %c0_56] : memref<2x10x10x4xf32, #tpu.memory_space<vmem>>, vector<2x8x8x4xf32>
    %17 = tpu.concatenate %8, %9, %10, %11, %12, %13, %14, %15, %16 in 3 : vector<2x8x8x4xf32>, vector<2x8x8x4xf32>, vector<2x8x8x4xf32>, vector<2x8x8x4xf32>, vector<2x8x8x4xf32>, vector<2x8x8x4xf32>, vector<2x8x8x4xf32>, vector<2x8x8x4xf32>, vector<2x8x8x4xf32> -> vector<2x8x8x36xf32>
    %18 = vector.shape_cast %17 : vector<2x8x8x36xf32> to vector<128x36xf32>
    %c0_57 = arith.constant 0 : index
    %c0_58 = arith.constant 0 : index
    %19 = vector.load %arg2[%c0_57, %c0_58] : memref<36x8xf32, #tpu.memory_space<vmem>>, vector<36x8xf32>
    %cst_59 = arith.constant dense<0.000000e+00> : vector<128x8xf32>
    %20 = tpu.matmul %18, %19, %cst_59 {dimension_numbers = #tpu.dot_dimension_numbers<[1], [0], [0], [1], [0, 0, 1, 1], [], []>} : vector<128x36xf32>, vector<36x8xf32>, vector<128x8xf32> -> vector<128x8xf32>
    %c0_60 = arith.constant 0 : index
    %c0_61 = arith.constant 0 : index
    %21 = vector.load %arg3[%c0_60, %c0_61] : memref<1x8xf32, #tpu.memory_space<vmem>>, vector<1x8xf32>
    %22 = vector.broadcast %21 : vector<1x8xf32> to vector<128x8xf32>
    %23 = arith.addf %20, %22 : vector<128x8xf32>
    %cst_62 = arith.constant dense<0.000000e+00> : vector<8xf32>
    %24 = vector.multi_reduction <add>, %23, %cst_62 [0] : vector<128x8xf32> to vector<8xf32>
    %25 = vector.shape_cast %24 : vector<8xf32> to vector<1x8xf32>
    %cst_63 = arith.constant 7.812500e-03 : f32
    %26 = vector.broadcast %cst_63 : f32 to vector<1x8xf32>
    %27 = arith.mulf %25, %26 : vector<1x8xf32>
    %28 = vector.broadcast %27 : vector<1x8xf32> to vector<128x8xf32>
    %29 = arith.subf %23, %28 : vector<128x8xf32>
    %c0_64 = arith.constant 0 : index
    %c0_65 = arith.constant 0 : index
    %30 = vector.load %arg7[%c0_64, %c0_65] : memref<1x8xf32, #tpu.memory_space<vmem>>, vector<1x8xf32>
    tpu.vector_store %arg7[%c0_64, %c0_65], %27 {strides = array<i32>} : memref<1x8xf32, #tpu.memory_space<vmem>>, vector<1x8xf32>,
    %31 = arith.mulf %29, %29 : vector<128x8xf32>
    %cst_66 = arith.constant dense<0.000000e+00> : vector<8xf32>
    %32 = vector.multi_reduction <add>, %31, %cst_66 [0] : vector<128x8xf32> to vector<8xf32>
    %33 = vector.shape_cast %32 : vector<8xf32> to vector<1x8xf32>
    %cst_67 = arith.constant 7.812500e-03 : f32
    %34 = vector.broadcast %cst_67 : f32 to vector<1x8xf32>
    %35 = arith.mulf %33, %34 : vector<1x8xf32>
    %c0_68 = arith.constant 0 : index
    %c0_69 = arith.constant 0 : index
    %36 = vector.load %arg8[%c0_68, %c0_69] : memref<1x8xf32, #tpu.memory_space<vmem>>, vector<1x8xf32>
    tpu.vector_store %arg8[%c0_68, %c0_69], %35 {strides = array<i32>} : memref<1x8xf32, #tpu.memory_space<vmem>>, vector<1x8xf32>,
    %c0_70 = arith.constant 0 : index
    %c0_71 = arith.constant 0 : index
    %37 = vector.load %arg6[%c0_70, %c0_71] : memref<128x8xf32, #tpu.memory_space<vmem>>, vector<128x8xf32>
    tpu.vector_store %arg6[%c0_70, %c0_71], %23 {strides = array<i32>} : memref<128x8xf32, #tpu.memory_space<vmem>>, vector<128x8xf32>,
    return
  }
  func.func @transform_0(%arg0: i32) -> (i32, i32, i32, i32) {
    %c0_i32 = arith.constant 0 : i32
    %c0_i32_0 = arith.constant 0 : i32
    %c0_i32_1 = arith.constant 0 : i32
    %c0_i32_2 = arith.constant 0 : i32
    %c0_i32_3 = arith.constant 0 : i32
    return %c0_i32, %c0_i32_0, %c0_i32_1, %c0_i32_2 : i32, i32, i32, i32
  }
  func.func @transform_1(%arg0: i32) -> (i32, i32) {
    %c0_i32 = arith.constant 0 : i32
    %c0_i32_0 = arith.constant 0 : i32
    %c0_i32_1 = arith.constant 0 : i32
    return %c0_i32, %c0_i32_0 : i32, i32
  }
  func.func @transform_2(%arg0: i32) -> (i32, i32) {
    %c0_i32 = arith.constant 0 : i32
    %c0_i32_0 = arith.constant 0 : i32
    %c0_i32_1 = arith.constant 0 : i32
    return %c0_i32, %c0_i32_0 : i32, i32
  }
  func.func @transform_3(%arg0: i32) -> (i32, i32) {
    %c0_i32 = arith.constant 0 : i32
    %c0_i32_0 = arith.constant 0 : i32
    %c0_i32_1 = arith.constant 0 : i32
    return %c0_i32, %c0_i32_0 : i32, i32
  }
  func.func @transform_4(%arg0: i32) -> (i32, i32) {
    %c0_i32 = arith.constant 0 : i32
    %c0_i32_0 = arith.constant 0 : i32
    %c0_i32_1 = arith.constant 0 : i32
    return %c0_i32, %c0_i32_0 : i32, i32
  }
  func.func @transform_5(%arg0: i32) -> (i32, i32) {
    %c0_i32 = arith.constant 0 : i32
    %c0_i32_0 = arith.constant 0 : i32
    %c0_i32_1 = arith.constant 0 : i32
    return %c0_i32, %c0_i32_0 : i32, i32
  }
  func.func @transform_6(%arg0: i32) -> (i32, i32) {
    %c0_i32 = arith.constant 0 : i32
    %c0_i32_0 = arith.constant 0 : i32
    %c0_i32_1 = arith.constant 0 : i32
    return %c0_i32, %c0_i32_0 : i32, i32
  }
  func.func @transform_7(%arg0: i32) -> (i32, i32) {
    %c0_i32 = arith.constant 0 : i32
    %c0_i32_0 = arith.constant 0 : i32
    %c0_i32_1 = arith.constant 0 : i32
    return %c0_i32, %c0_i32_0 : i32, i32
  }
}

</mosaic_0001>

<bundles_post_ra>
// kernel: tpu_custom_call.1
= control target key start
LH: loop header
LB: loop body
LE: loop exit
PB: predicated region body
PF: predicated region fallthrough
CT: control target
= control target key end

     0   :  { %13 = vsyncpa [#allocation4], 0  ;;  %vm41_vm0 = vcmask 31744   ;;  %vm43_vm1 = vcmask 25600   ;;  %v1409_v1 = vmov 0.0   ;;  %vm53_vm2 = vcmask 24576   ;;  %s2187_s0 = inlined_call_operand.vmem [shape: f32[2,8,8,4], index: 0, kind: input, shape index: {}]   ;;  %s2188_s1 = inlined_call_operand.vmem [shape: f32[36,8], index: 1, kind: input, shape index: {}]   ;;  %s2189_s2 = inlined_call_operand.vmem [shape: f32[1,8], index: 2, kind: input, shape index: {}]   ;;  %s2190_s3 = inlined_call_operand.vmem [shape: f32[1,4], index: 3, kind: input, shape index: {}]   ;;  %s2191_s4 = inlined_call_operand.vmem [shape: f32[1,4], index: 4, kind: input, shape index: {}]   ;;  %s2192_s5 = inlined_call_operand.vmem [shape: f32[128,8], index: 5, kind: output, shape index: {0}]   ;;  %s2193_s6 = inlined_call_operand.hbm [shape: f32[1,8], index: 6, kind: output, shape index: {1}]   ;;  %s2194_s7 = inlined_call_operand.hbm [shape: f32[1,8], index: 7, kind: output, shape index: {2}]  }
   0x1   :  { %v25_v0 = vld [vmem:[%s2187_s0] sm:$0xff]  ;;  %42 = vst.msk [vmem:[#allocation2] sm:$0xff] %vm41_vm0, %v1409_v1  ;;  %45 = vst.msk [vmem:[#allocation2 + $0xa0] sm:$0xff] %vm41_vm0, %v1409_v1  ;;  %v26_v2 = vld [vmem:[%s2187_s0 + $0x8] sm:$0xff] }
   0x2   :  { %44 = vst.msk [vmem:[#allocation2 + $0x8] sm:$0x3] %vm43_vm1, %v1409_v1  ;;  %46 = vst.msk [vmem:[#allocation2 + $0xa8] sm:$0x3] %vm43_vm1, %v1409_v1  ;;  %v27_v3 = vld [vmem:[%s2187_s0 + $0x10] sm:$0xff]  ;;  %v28_v4 = vld [vmem:[%s2187_s0 + $0x18] sm:$0xff] }
   0x3   :  { %48 = vst.msk [vmem:[#allocation2 + $0x90] sm:$0xff] %vm41_vm0, %v1409_v1  ;;  %50 = vst.msk [vmem:[#allocation2 + $0x130] sm:$0xff] %vm41_vm0, %v1409_v1  ;;  %v29_v5 = vld [vmem:[%s2187_s0 + $0x20] sm:$0xff]  ;;  %v30_v6 = vld [vmem:[%s2187_s0 + $0x28] sm:$0xff] }
   0x4   :  { %49 = vst.msk [vmem:[#allocation2 + $0x98] sm:$0x3] %vm43_vm1, %v1409_v1  ;;  %51 = vst.msk [vmem:[#allocation2 + $0x138] sm:$0x3] %vm43_vm1, %v1409_v1  ;;  %v31_v7 = vld [vmem:[%s2187_s0 + $0x30] sm:$0xff]  ;;  %v32_v8 = vld [vmem:[%s2187_s0 + $0x38] sm:$0xff] }
   0x5   :  { %86 = vst.msk [vmem:[#allocation2 + $0x11] sm:$0xff] %vm41_vm0, %v25_v0  ;;  %87 = vst.msk [vmem:[#allocation2 + $0x21] sm:$0xff] %vm41_vm0, %v26_v2  ;;  %v33_v9 = vld [vmem:[%s2187_s0 + $0x40] sm:$0xff]  ;;  %v34_v10 = vld [vmem:[%s2187_s0 + $0x48] sm:$0xff] }
   0x6   :  { %70 = vst.msk [vmem:[#allocation2 + $0x19] sm:$0x1] %vm53_vm2, %v1409_v1  ;;  %54 = vst.msk [vmem:[#allocation2 + $0x10] sm:$0x1] %vm53_vm2, %v1409_v1 }
   0x7   :  { %55 = vst.msk [vmem:[#allocation2 + $0x20] sm:$0x1] %vm53_vm2, %v1409_v1  ;;  %56 = vst.msk [vmem:[#allocation2 + $0x30] sm:$0x1] %vm53_vm2, %v1409_v1 }
   0x8   :  { %57 = vst.msk [vmem:[#allocation2 + $0x40] sm:$0x1] %vm53_vm2, %v1409_v1  ;;  %58 = vst.msk [vmem:[#allocation2 + $0x50] sm:$0x1] %vm53_vm2, %v1409_v1 }
   0x9   :  { %59 = vst.msk [vmem:[#allocation2 + $0x60] sm:$0x1] %vm53_vm2, %v1409_v1  ;;  %60 = vst.msk [vmem:[#allocation2 + $0x70] sm:$0x1] %vm53_vm2, %v1409_v1 }
   0xa   :  { %61 = vst.msk [vmem:[#allocation2 + $0x80] sm:$0x1] %vm53_vm2, %v1409_v1  ;;  %62 = vst.msk [vmem:[#allocation2 + $0xb0] sm:$0x1] %vm53_vm2, %v1409_v1 }
   0xb   :  { %63 = vst.msk [vmem:[#allocation2 + $0xc0] sm:$0x1] %vm53_vm2, %v1409_v1  ;;  %64 = vst.msk [vmem:[#allocation2 + $0xd0] sm:$0x1] %vm53_vm2, %v1409_v1 }
   0xc   :  { %65 = vst.msk [vmem:[#allocation2 + $0xe0] sm:$0x1] %vm53_vm2, %v1409_v1  ;;  %66 = vst.msk [vmem:[#allocation2 + $0xf0] sm:$0x1] %vm53_vm2, %v1409_v1 }
   0xd   :  { %67 = vst.msk [vmem:[#allocation2 + $0x100] sm:$0x1] %vm53_vm2, %v1409_v1  ;;  %68 = vst.msk [vmem:[#allocation2 + $0x110] sm:$0x1] %vm53_vm2, %v1409_v1 }
   0xe   :  { %69 = vst.msk [vmem:[#allocation2 + $0x120] sm:$0x1] %vm53_vm2, %v1409_v1  ;;  %71 = vst.msk [vmem:[#allocation2 + $0x29] sm:$0x1] %vm53_vm2, %v1409_v1 }
   0xf   :  { %72 = vst.msk [vmem:[#allocation2 + $0x39] sm:$0x1] %vm53_vm2, %v1409_v1  ;;  %73 = vst.msk [vmem:[#allocation2 + $0x49] sm:$0x1] %vm53_vm2, %v1409_v1 }
  0x10   :  { %74 = vst.msk [vmem:[#allocation2 + $0x59] sm:$0x1] %vm53_vm2, %v1409_v1  ;;  %75 = vst.msk [vmem:[#allocation2 + $0x69] sm:$0x1] %vm53_vm2, %v1409_v1 }
  0x11   :  { %76 = vst.msk [vmem:[#allocation2 + $0x79] sm:$0x1] %vm53_vm2, %v1409_v1  ;;  %77 = vst.msk [vmem:[#allocation2 + $0x89] sm:$0x1] %vm53_vm2, %v1409_v1 }
  0x12   :  { %78 = vst.msk [vmem:[#allocation2 + $0xb9] sm:$0x1] %vm53_vm2, %v1409_v1  ;;  %79 = vst.msk [vmem:[#allocation2 + $0xc9] sm:$0x1] %vm53_vm2, %v1409_v1 }
  0x13   :  { %80 = vst.msk [vmem:[#allocation2 + $0xd9] sm:$0x1] %vm53_vm2, %v1409_v1  ;;  %81 = vst.msk [vmem:[#allocation2 + $0xe9] sm:$0x1] %vm53_vm2, %v1409_v1 }
  0x14   :  { %82 = vst.msk [vmem:[#allocation2 + $0xf9] sm:$0x1] %vm53_vm2, %v1409_v1  ;;  %83 = vst.msk [vmem:[#allocation2 + $0x109] sm:$0x1] %vm53_vm2, %v1409_v1 }
  0x15   :  { %84 = vst.msk [vmem:[#allocation2 + $0x119] sm:$0x1] %vm53_vm2, %v1409_v1  ;;  %85 = vst.msk [vmem:[#allocation2 + $0x129] sm:$0x1] %vm53_vm2, %v1409_v1 }
  0x16   :  { %88 = vst.msk [vmem:[#allocation2 + $0x31] sm:$0xff] %vm41_vm0, %v27_v3  ;;  %89 = vst.msk [vmem:[#allocation2 + $0x41] sm:$0xff] %vm41_vm0, %v28_v4 }
  0x17   :  { %90 = vst.msk [vmem:[#allocation2 + $0x51] sm:$0xff] %vm41_vm0, %v29_v5  ;;  %91 = vst.msk [vmem:[#allocation2 + $0x61] sm:$0xff] %vm41_vm0, %v30_v6 }
  0x18   :  { %92 = vst.msk [vmem:[#allocation2 + $0x71] sm:$0xff] %vm41_vm0, %v31_v7  ;;  %93 = vst.msk [vmem:[#allocation2 + $0x81] sm:$0xff] %vm41_vm0, %v32_v8 }
  0x19   :  { %94 = vst.msk [vmem:[#allocation2 + $0xb1] sm:$0xff] %vm41_vm0, %v33_v9 }
  0x1a   :  { %14 = vsyncpa [#allocation6], 0  ;;  %95 = vst.msk [vmem:[#allocation2 + $0xc1] sm:$0xff] %vm41_vm0, %v34_v10  ;;  %v134_v11 = vld [vmem:[#allocation2 + $0x2] sm:$0xff]  ;;  %s1410_s19 = smov 8   ;;  %s1411_s20 = smov 4  }
  0x1b   :  { %v118_v12 = vld [vmem:[#allocation2 + $0x1] sm:$0xff]  ;;  %327 = vrot.lane.b32.xlu1 %v134_v11, %s1410_s19  ;;  %v135_v13 = vld [vmem:[#allocation2 + $0x12] sm:$0xff]  ;;  %s1412_s21 = smov 12   ;;  %s1413_s24 = smov 16   ;;  %vm955_vm3 = vcmask 1043456   ;;  %vm775_vm4 = vcmask 64512  }
  0x1c   :  { %263 = vrot.lane.b32.xlu0 %v118_v12, %s1411_s20  ;;  %v119_v14 = vld [vmem:[#allocation2 + $0x11] sm:$0xff]  ;;  %v1540_v15 = vld [vmem:[#allocation2 + $0x20] sm:$0xff]  ;;  %s1414_s25 = smov 20   ;;  %v895_v22 = vld [vmem:[%s2188_s1 + $0x8] sm:$0xff]  ;;  %s1415_s28 = smov 24   ;;  %vm792_vm5 = vcmask 97280  }
  0x1d   :  { %v1542_v16 = vld [vmem:[#allocation2 + $0x10] sm:$0xff]  ;;  %v120_v17 = vld [vmem:[#allocation2 + $0x21] sm:$0xff]  ;;  %v897_v27 = vld [vmem:[%s2188_s1 + $0x18] sm:$0xff]  ;;  %s1416_s12 = smov 28   ;;  %s1417_s15 = smov 32   ;;  %vm809_vm6 = vcmask 130048  }
  0x1e   :  { %v35_v18 = vld [vmem:[%s2187_s0 + $0x50] sm:$0xff]  ;;  %v136_v19 = vld [vmem:[#allocation2 + $0x22] sm:$0xff]  ;;  %v36_v29 = vld [vmem:[%s2187_s0 + $0x58] sm:$0xff]  ;;  %vm826_vm7 = vcmask 162816   ;;  %vm843_vm8 = vcmask 195584   ;;  %vm860_vm9 = vcmask 228352  }
  0x1f   :  { %329 = vrot.lane.b32.xlu1 %v135_v13, %s1410_s19  ;;  %96 = vst.msk [vmem:[#allocation2 + $0xd1] sm:$0xff] %vm41_vm0, %v35_v18  ;;  %v121_v20 = vld [vmem:[#allocation2 + $0x31] sm:$0xff]  ;;  %v894_v21 = vld [vmem:[%s2188_s1] sm:$0xff]  ;;  %97 = vst.msk [vmem:[#allocation2 + $0xe1] sm:$0xff] %vm41_vm0, %v36_v29  ;;  %vm877_vm10 = vcmask 261120   ;;  %vm906_vm11 = vcmask 293888  }
  0x20   :  { %265 = vrot.lane.b32.xlu0 %v119_v14, %s1411_s20  ;;  %v1336_v23 = vpack.c.bf16 %v895_v22, %v894_v21  ;;  %v1567_v24 = vld [vmem:[#allocation2 + $0x30] sm:$0xff]  ;;  %v898_v30 = vld [vmem:[%s2188_s1 + $0x20] sm:$0xf]  ;;  %v38_v38 = vld [vmem:[%s2187_s0 + $0x68] sm:$0xff]  ;;  %vm1158_vm12 = vcmask 57344  }
  0x21   :  { %v137_v25 = vld [vmem:[#allocation2 + $0x32] sm:$0xff]  ;;  %v1588_v31 = vld [vmem:[#allocation2 + $0x40] sm:$0xff]  ;;  %99 = vst.msk [vmem:[#allocation2 + $0x101] sm:$0xff] %vm41_vm0, %v38_v38 }
  0x22   :  { %1337 = vmatprep.subr.bf16.mxu0 %v1336_v23  ;;  %1344 = vmatprep.subr.bf16.mxu1 %v1336_v23  ;;  %v896_v26 = vld [vmem:[%s2188_s1 + $0x10] sm:$0xff]  ;;  %v169_v32 = vld [vmem:[#allocation2 + $0x41] sm:$0xff]  ;;  %v40_v46 = vld [vmem:[%s2187_s0 + $0x78] sm:$0xff] }
  0x23   :  { %393 = vrot.lane.b32.xlu1 %v1540_v15, %s1412_s21  ;;  %1339 = vmatpush3.bf16.msra.mxu0 %v1336_v23  ;;  %v1340_v28 = vpack.c.bf16 %v897_v27, %v896_v26  ;;  %v37_v33 = vld [vmem:[%s2187_s0 + $0x60] sm:$0xff]  ;;  %v123_v35 = vld [vmem:[#allocation2 + $0x51] sm:$0xff]  ;;  %101 = vst.msk [vmem:[#allocation2 + $0x121] sm:$0xff] %vm41_vm0, %v40_v46 }
  0x24   :  { %391 = vrot.lane.b32.xlu0 %v1542_v16, %s1412_s21  ;;  %1347 = vmatpush3.bf16.msra.mxu1 %v1336_v23  ;;  %98 = vst.msk [vmem:[#allocation2 + $0xf1] sm:$0xff] %vm41_vm0, %v37_v33  ;;  %v138_v34 = vld [vmem:[#allocation2 + $0x42] sm:$0xff]  ;;  %v1608_v36 = vld [vmem:[#allocation2 + $0x50] sm:$0xff] }
  0x25   :  { %1341 = vmatprep.subr.bf16.mxu0 %v1340_v28  ;;  %1345 = vmatprep.subr.bf16.mxu1 %v1340_v28  ;;  %v139_v37 = vld [vmem:[#allocation2 + $0x52] sm:$0xff]  ;;  %v1620_v39 = vld [vmem:[#allocation2 + $0x60] sm:$0xff] }
  0x26   :  { %v171_v40 = vld [vmem:[#allocation2 + $0x61] sm:$0xff]  ;;  %v39_v41 = vld [vmem:[%s2187_s0 + $0x70] sm:$0xff] }
  0x27   :  { %267 = vrot.lane.b32.xlu1 %v120_v17, %s1411_s20  ;;  %1343 = vmatpush3.bf16.msra.mxu0 %v1340_v28  ;;  %100 = vst.msk [vmem:[#allocation2 + $0x111] sm:$0xff] %vm41_vm0, %v39_v41  ;;  %v140_v42 = vld [vmem:[#allocation2 + $0x62] sm:$0xff]  ;;  %v125_v43 = vld [vmem:[#allocation2 + $0x71] sm:$0xff] }
  0x28   :  { %455 = vrot.lane.b32.xlu0 %v119_v14, %s1413_s24  ;;  %1348 = vmatpush3.bf16.msra.mxu1 %v1340_v28  ;;  %v1640_v44 = vld [vmem:[#allocation2 + $0x70] sm:$0xff]  ;;  %v157_v47 = vld [vmem:[#allocation2 + $0x80] sm:$0xff] }
  0x29   :  { %1310 = vmatprep.subr.msk.mxu0 %vm955_vm3, %v898_v30  ;;  %1346 = vmatprep.subr.msk.mxu1 %vm955_vm3, %v898_v30  ;;  %v141_v45 = vld [vmem:[#allocation2 + $0x72] sm:$0xff]  ;;  %v173_v48 = vld [vmem:[#allocation2 + $0x81] sm:$0xff] }
  0x2a   :  { %v126_v49 = vld [vmem:[#allocation2 + $0xa1] sm:$0xff]  ;;  %v127_v51 = vld [vmem:[#allocation2 + $0xb1] sm:$0xff] }
  0x2b   :  { %519 = vrot.lane.b32.xlu1 %v135_v13, %s1414_s25  ;;  %1311 = vmatpush3.msk.msra.mxu0 %vm955_vm3, %v898_v30  ;;  %v142_v50 = vld [vmem:[#allocation2 + $0xa2] sm:$0xff]  ;;  %v1666_v57 = vld [vmem:[#allocation2 + $0xb0] sm:$0xff] }
  0x2c   :  { %457 = vrot.lane.b32.xlu0 %v120_v17, %s1413_s24  ;;  %1349 = vmatpush3.msk.msra.mxu1 %vm955_vm3, %v898_v30  ;;  %v189_v54 = vld [vmem:[#allocation2 + $0x82] sm:$0xff]  ;;  %v143_v58 = vld [vmem:[#allocation2 + $0xb2] sm:$0xff] }
  0x2d   :  { %v206_v61 = vld [vmem:[#allocation2 + $0x90] sm:$0xff]  ;;  %v1677_v0 = vld [vmem:[#allocation2 + $0xc0] sm:$0xff] }
  0x2e   :  { %v222_v3 = vld [vmem:[#allocation2 + $0x91] sm:$0xff]  ;;  %v175_v6 = vld [vmem:[#allocation2 + $0xc1] sm:$0xff] }
  0x2f   :  { %331 = vrot.lane.b32.xlu1 %v136_v19, %s1410_s19  ;;  %v238_v9 = vld [vmem:[#allocation2 + $0x92] sm:$0xff]  ;;  %v102_v12 = vld [vmem:[#allocation2] sm:$0xff] }
  0x30   :  { %269 = vrot.lane.b32.xlu0 %v121_v20, %s1411_s20  ;;  %v144_v13 = vld [vmem:[#allocation2 + $0xc2] sm:$0xff]  ;;  %v129_v14 = vld [vmem:[#allocation2 + $0xd1] sm:$0xff] }
  0x31   :  { %v1709_v28 = vld [vmem:[#allocation2 + $0xd0] sm:$0xff] }
  0x32   :  { %v145_v29 = vld [vmem:[#allocation2 + $0xd2] sm:$0xff] }
  0x33   :  { %583 = vrot.lane.b32.xlu1 %v1540_v15, %s1415_s28 }
  0x34   :  { %521 = vrot.lane.b32.xlu0 %v136_v19, %s1414_s25 }
  0x37   :  { %395 = vrot.lane.b32.xlu1 %v1567_v24, %s1412_s21 }
  0x38   :  { %333 = vrot.lane.b32.xlu0 %v137_v25, %s1410_s19 }
  0x3b   :  { %647 = vrot.lane.b32.xlu1 %v120_v17, %s1416_s12 }
  0x3c   :  { %585 = vrot.lane.b32.xlu0 %v1567_v24, %s1415_s28 }
  0x3f   :  { %459 = vrot.lane.b32.xlu1 %v121_v20, %s1413_s24 }
  0x40   :  { %397 = vrot.lane.b32.xlu0 %v1588_v31, %s1412_s21 }
  0x43   :  { %711 = vrot.lane.b32.xlu1 %v136_v19, %s1417_s15 }
  0x44   :  { %649 = vrot.lane.b32.xlu0 %v121_v20, %s1416_s12 }
  0x47   :  { %461 = vrot.lane.b32.xlu1 %v169_v32, %s1413_s24 }
  0x48   :  { %271 = vrot.lane.b32.xlu0 %v169_v32, %s1411_s20 }
  0x4b   :  { %713 = vrot.lane.b32.xlu1 %v137_v25, %s1417_s15 }
  0x4c   :  { %523 = vrot.lane.b32.xlu0 %v137_v25, %s1414_s25 }
  0x4f   :  { %335 = vrot.lane.b32.xlu1 %v138_v34, %s1410_s19 }
  0x50   :  { %273 = vrot.lane.b32.xlu0 %v123_v35, %s1411_s20 }
  0x53   :  { %587 = vrot.lane.b32.xlu1 %v1588_v31, %s1415_s28 }
  0x54   :  { %525 = vrot.lane.b32.xlu0 %v138_v34, %s1414_s25 }
  0x57   :  { %399 = vrot.lane.b32.xlu1 %v1608_v36, %s1412_s21 }
  0x58   :  { %337 = vrot.lane.b32.xlu0 %v139_v37, %s1410_s19 }
  0x5b   :  { %651 = vrot.lane.b32.xlu1 %v169_v32, %s1416_s12 }
  0x5c   :  { %589 = vrot.lane.b32.xlu0 %v1608_v36, %s1415_s28 }
  0x5f   :  { %463 = vrot.lane.b32.xlu1 %v123_v35, %s1413_s24 }
  0x60   :  { %401 = vrot.lane.b32.xlu0 %v1620_v39, %s1412_s21 }
  0x63   :  { %715 = vrot.lane.b32.xlu1 %v138_v34, %s1417_s15 }
  0x64   :  { %653 = vrot.lane.b32.xlu0 %v123_v35, %s1416_s12 }
  0x67   :  { %465 = vrot.lane.b32.xlu1 %v171_v40, %s1413_s24 }
  0x68   :  { %275 = vrot.lane.b32.xlu0 %v171_v40, %s1411_s20 }
  0x6b   :  { %717 = vrot.lane.b32.xlu1 %v139_v37, %s1417_s15 }
  0x6c   :  { %527 = vrot.lane.b32.xlu0 %v139_v37, %s1414_s25 }
  0x6f   :  { %339 = vrot.lane.b32.xlu1 %v140_v42, %s1410_s19 }
  0x70   :  { %277 = vrot.lane.b32.xlu0 %v125_v43, %s1411_s20 }
  0x73   :  { %591 = vrot.lane.b32.xlu1 %v1620_v39, %s1415_s28 }
  0x74   :  { %529 = vrot.lane.b32.xlu0 %v140_v42, %s1414_s25 }
  0x77   :  { %403 = vrot.lane.b32.xlu1 %v1640_v44, %s1412_s21 }
  0x78   :  { %341 = vrot.lane.b32.xlu0 %v141_v45, %s1410_s19 }
  0x7b   :  { %655 = vrot.lane.b32.xlu1 %v171_v40, %s1416_s12 }
  0x7c   :  { %593 = vrot.lane.b32.xlu0 %v1640_v44, %s1415_s28 }
  0x7f   :  { %467 = vrot.lane.b32.xlu1 %v125_v43, %s1413_s24 }
  0x80   :  { %405 = vrot.lane.b32.xlu0 %v157_v47, %s1412_s21 }
  0x83   :  { %719 = vrot.lane.b32.xlu1 %v140_v42, %s1417_s15 }
  0x84   :  { %657 = vrot.lane.b32.xlu0 %v125_v43, %s1416_s12 }
  0x87   :  { %469 = vrot.lane.b32.xlu1 %v173_v48, %s1413_s24 }
  0x88   :  { %279 = vrot.lane.b32.xlu0 %v126_v49, %s1411_s20 }
  0x8b   :  { %721 = vrot.lane.b32.xlu1 %v141_v45, %s1417_s15 }
  0x8c   :  { %531 = vrot.lane.b32.xlu0 %v141_v45, %s1414_s25  ;;  %v1731_v45 = vld [vmem:[#allocation2 + $0xe0] sm:$0xff] }
  0x8d   :  { %v328_v52 = vpop.permute.xlu1 %327 }
  0x8e   :  { %v264_v53 = vpop.permute.xlu0 %263 }
  0x8f   :  { %343 = vrot.lane.b32.xlu1 %v142_v50, %s1410_s19  ;;  %v759_v17 = vsel %vm41_vm0, %v102_v12, %v264_v53 }
  0x90   :  { %281 = vrot.lane.b32.xlu0 %v127_v51, %s1411_s20  ;;  %v776_v20 = vsel %vm775_vm4, %v759_v17, %v328_v52  ;;  %v177_v52 = vld [vmem:[#allocation2 + $0xe1] sm:$0xff] }
  0x91   :  { %v1662_v55 = vpop.permute.xlu1 %329 }
  0x92   :  { %v266_v56 = vpop.permute.xlu0 %265 }
  0x93   :  { %595 = vrot.lane.b32.xlu1 %v157_v47, %s1415_s28  ;;  %v760_v30 = vsel %vm41_vm0, %v1542_v16, %v266_v56 }
  0x94   :  { %533 = vrot.lane.b32.xlu0 %v189_v54, %s1414_s25  ;;  %v777_v37 = vsel %vm775_vm4, %v760_v30, %v1662_v55  ;;  %v179_v30 = vld [vmem:[#allocation2 + $0x101] sm:$0xff] }
  0x95   :  { %v1668_v59 = vpop.permute.xlu1 %393 }
  0x96   :  { %v392_v60 = vpop.permute.xlu0 %391  ;;  %v794_v16 = vsel %vm792_vm5, %v777_v37, %v1668_v59  ;;  %v131_v59 = vld [vmem:[#allocation2 + $0xf1] sm:$0xff]  ;;  %v148_v37 = vld [vmem:[#allocation2 + $0x102] sm:$0xff] }
  0x97   :  { %407 = vrot.lane.b32.xlu1 %v1666_v57, %s1412_s21  ;;  %v793_v21 = vsel %vm792_vm5, %v776_v20, %v392_v60 }
  0x98   :  { %345 = vrot.lane.b32.xlu0 %v143_v58, %s1410_s19 }
  0x99   :  { %v1673_v62 = vpop.permute.xlu1 %267 }
  0x9a   :  { %v456_v63 = vpop.permute.xlu0 %455 }
  0x9b   :  { %659 = vrot.lane.b32.xlu1 %v173_v48, %s1416_s12  ;;  %v810_v25 = vsel %vm809_vm6, %v793_v21, %v456_v63  ;;  %v761_v63 = vsel %vm41_vm0, %v1540_v15, %v1673_v62  ;;  %v1770_v62 = vld [vmem:[#allocation2 + $0xf0] sm:$0xff] }
  0x9c   :  { %597 = vrot.lane.b32.xlu0 %v206_v61, %s1415_s28 }
  0x9d   :  { %v520_v1 = vpop.permute.xlu1 %519 }
  0x9e   :  { %v458_v2 = vpop.permute.xlu0 %457  ;;  %v827_v26 = vsel %vm826_vm7, %v810_v25, %v520_v1 }
  0x9f   :  { %471 = vrot.lane.b32.xlu1 %v127_v51, %s1413_s24  ;;  %v811_v41 = vsel %vm809_vm6, %v794_v16, %v458_v2  ;;  %v133_v16 = vld [vmem:[#allocation2 + $0x111] sm:$0xff] }
  0xa0   :  { %409 = vrot.lane.b32.xlu0 %v1677_v0, %s1412_s21 }
  0xa1   :  { %v1682_v4 = vpop.permute.xlu1 %331 }
  0xa2   :  { %v1684_v5 = vpop.permute.xlu0 %269  ;;  %v778_v1 = vsel %vm775_vm4, %v761_v63, %v1682_v4  ;;  %v147_v4 = vld [vmem:[#allocation2 + $0xf2] sm:$0xff] }
  0xa3   :  { %723 = vrot.lane.b32.xlu1 %v189_v54, %s1417_s15 }
  0xa4   :  { %661 = vrot.lane.b32.xlu0 %v222_v3, %s1416_s12 }
  0xa5   :  { %v584_v7 = vpop.permute.xlu1 %583 }
  0xa6   :  { %v522_v8 = vpop.permute.xlu0 %521  ;;  %v844_v27 = vsel %vm843_vm8, %v827_v26, %v584_v7 }
  0xa7   :  { %473 = vrot.lane.b32.xlu1 %v175_v6, %s1413_s24  ;;  %v828_v42 = vsel %vm826_vm7, %v811_v41, %v522_v8 }
  0xa8   :  { %283 = vrot.lane.b32.xlu0 %v175_v6, %s1411_s20 }
  0xa9   :  { %v1690_v10 = vpop.permute.xlu1 %395 }
  0xaa   :  { %v1692_v11 = vpop.permute.xlu0 %333  ;;  %v795_v2 = vsel %vm792_vm5, %v778_v1, %v1690_v10 }
  0xab   :  { %725 = vrot.lane.b32.xlu1 %v238_v9, %s1417_s15 }
  0xac   :  { %535 = vrot.lane.b32.xlu0 %v143_v58, %s1414_s25  ;;  %v146_v58 = vld [vmem:[#allocation2 + $0xe2] sm:$0xff] }
  0xad   :  { %v648_v18 = vpop.permute.xlu1 %647 }
  0xae   :  { %v586_v19 = vpop.permute.xlu0 %585  ;;  %v861_v32 = vsel %vm860_vm9, %v844_v27, %v648_v18 }
  0xaf   :  { %347 = vrot.lane.b32.xlu1 %v144_v13, %s1410_s19  ;;  %v845_v43 = vsel %vm843_vm8, %v828_v42, %v586_v19 }
  0xb0   :  { %285 = vrot.lane.b32.xlu0 %v129_v14, %s1411_s20 }
  0xb1   :  { %v460_v22 = vpop.permute.xlu1 %459 }
  0xb2   :  { %v1701_v23 = vpop.permute.xlu0 %397  ;;  %v812_v7 = vsel %vm809_vm6, %v795_v2, %v460_v22 }
  0xb3   :  { %599 = vrot.lane.b32.xlu1 %v1677_v0, %s1415_s28 }
  0xb4   :  { %537 = vrot.lane.b32.xlu0 %v144_v13, %s1414_s25 }
  0xb5   :  { %v712_v33 = vpop.permute.xlu1 %711 }
  0xb6   :  { %v650_v34 = vpop.permute.xlu0 %649  ;;  %v878_v35 = vsel %vm877_vm10, %v861_v32, %v712_v33 }
  0xb7   :  { %411 = vrot.lane.b32.xlu1 %v1709_v28, %s1412_s21  ;;  %1312 = vmatprep.mubr.msk.f32.mxu0 %vm906_vm11, %v878_v35  ;;  %v862_v46 = vsel %vm860_vm9, %v845_v43, %v650_v34 }
  0xb8   :  { %349 = vrot.lane.b32.xlu0 %v145_v29, %s1410_s19 }
  0xb9   :  { %v462_v38 = vpop.permute.xlu1 %461 }
  0xba   :  { %v1723_v40 = vpop.permute.xlu0 %271 }
  0xbb   :  { %663 = vrot.lane.b32.xlu1 %v175_v6, %s1416_s12  ;;  %v763_v42 = vsel %vm41_vm0, %v1588_v31, %v1723_v40  ;;  %v1832_v40 = vld [vmem:[#allocation2 + $0x110] sm:$0xff] }
  0xbc   :  { %601 = vrot.lane.b32.xlu0 %v1709_v28, %s1415_s28 }
  0xbd   :  { %v714_v47 = vpop.permute.xlu1 %713 }
  0xbe   :  { %v524_v48 = vpop.permute.xlu0 %523  ;;  %v879_v49 = vsel %vm877_vm10, %v862_v46, %v714_v47 }
  0xbf   :  { %475 = vrot.lane.b32.xlu1 %v129_v14, %s1413_s24  ;;  %1313 = vmatmul.mubr.msk.f32.vlgmr.msra.gmra.mrb[0].mxu0 %vm906_vm11, %v879_v49  ;;  %v829_v8 = vsel %vm826_vm7, %v812_v7, %v524_v48 }
  0xc0   :  { %413 = vrot.lane.b32.xlu0 %v1731_v45, %s1412_s21 }
  0xc1   :  { %v1739_v50 = vpop.permute.xlu1 %335 }
  0xc2   :  { %v1741_v51 = vpop.permute.xlu0 %273  ;;  %v780_v43 = vsel %vm775_vm4, %v763_v42, %v1739_v50  ;;  %v149_v50 = vld [vmem:[#allocation2 + $0x112] sm:$0xff] }
  0xc3   :  { %727 = vrot.lane.b32.xlu1 %v144_v13, %s1417_s15 }
  0xc4   :  { %665 = vrot.lane.b32.xlu0 %v129_v14, %s1416_s12  ;;  %v762_v14 = vsel %vm41_vm0, %v1567_v24, %v1684_v5 }
  0xc5   :  { %v588_v53 = vpop.permute.xlu1 %587  ;;  %v779_v17 = vsel %vm775_vm4, %v762_v14, %v1692_v11  ;;  %v1793_v11 = vld [vmem:[#allocation2 + $0x100] sm:$0xff] }
  0xc6   :  { %v526_v54 = vpop.permute.xlu0 %525  ;;  %v846_v15 = vsel %vm843_vm8, %v829_v8, %v588_v53  ;;  %v796_v18 = vsel %vm792_vm5, %v779_v17, %v1701_v23 }
  0xc7   :  { %477 = vrot.lane.b32.xlu1 %v177_v52, %s1413_s24  ;;  %v813_v21 = vsel %vm809_vm6, %v796_v18, %v462_v38  ;;  %v214_v18 = vld [vmem:[#allocation2 + $0x130] sm:$0xff] }
  0xc8   :  { %287 = vrot.lane.b32.xlu0 %v177_v52, %s1411_s20  ;;  %v830_v24 = vsel %vm826_vm7, %v813_v21, %v526_v54 }
  0xc9   :  { %v1747_v55 = vpop.permute.xlu1 %399 }
  0xca   :  { %v1749_v56 = vpop.permute.xlu0 %337  ;;  %v797_v46 = vsel %vm792_vm5, %v780_v43, %v1747_v55 }
  0xcb   :  { %729 = vrot.lane.b32.xlu1 %v145_v29, %s1417_s15 }
  0xcc   :  { %539 = vrot.lane.b32.xlu0 %v145_v29, %s1414_s25 }
  0xcd   :  { %v652_v60 = vpop.permute.xlu1 %651 }
  0xce   :  { %v590_v61 = vpop.permute.xlu0 %589  ;;  %v863_v9 = vsel %vm860_vm9, %v846_v15, %v652_v60 }
  0xcf   :  { %351 = vrot.lane.b32.xlu1 %v146_v58, %s1410_s19  ;;  %v847_v5 = vsel %vm843_vm8, %v830_v24, %v590_v61 }
  0xd0   :  { %289 = vrot.lane.b32.xlu0 %v131_v59, %s1411_s20 }
  0xd1   :  { %v464_v3 = vpop.permute.xlu1 %463 }
  0xd2   :  { %v1762_v6 = vpop.permute.xlu0 %401  ;;  %v814_v49 = vsel %vm809_vm6, %v797_v46, %v464_v3 }
  0xd3   :  { %603 = vrot.lane.b32.xlu1 %v1731_v45, %s1415_s28 }
  0xd4   :  { %541 = vrot.lane.b32.xlu0 %v146_v58, %s1414_s25 }
  0xd5   :  { %v716_v10 = vpop.permute.xlu1 %715 }
  0xd6   :  { %v654_v12 = vpop.permute.xlu0 %653  ;;  %v880_v13 = vsel %vm877_vm10, %v863_v9, %v716_v10  ;;  %v181_v9 = vld [vmem:[#allocation2 + $0x121] sm:$0xff] }
  0xd7   :  { %415 = vrot.lane.b32.xlu1 %v1770_v62, %s1412_s21  ;;  %1315 = vmatprep.mubr.msk.f32.mxu0 %vm906_vm11, %v880_v13  ;;  %v864_v22 = vsel %vm860_vm9, %v847_v5, %v654_v12  ;;  %v197_v13 = vld [vmem:[#allocation2 + $0x122] sm:$0xff] }
  0xd8   :  { %353 = vrot.lane.b32.xlu0 %v147_v4, %s1410_s19 }
  0xd9   :  { %v466_v19 = vpop.permute.xlu1 %465 }
  0xda   :  { %v1785_v20 = vpop.permute.xlu0 %275 }
  0xdb   :  { %667 = vrot.lane.b32.xlu1 %v177_v52, %s1416_s12  ;;  %v765_v24 = vsel %vm41_vm0, %v1620_v39, %v1785_v20  ;;  %v246_v20 = vld [vmem:[#allocation2 + $0x132] sm:$0xff] }
  0xdc   :  { %605 = vrot.lane.b32.xlu0 %v1770_v62, %s1415_s28 }
  0xdd   :  { %v718_v25 = vpop.permute.xlu1 %717 }
  0xde   :  { %v528_v23 = vpop.permute.xlu0 %527  ;;  %v881_v26 = vsel %vm877_vm10, %v864_v22, %v718_v25  ;;  %v230_v22 = vld [vmem:[#allocation2 + $0x131] sm:$0xff] }
  0xdf   :  { %479 = vrot.lane.b32.xlu1 %v131_v59, %s1413_s24  ;;  %1316 = vmatmul.mubr.msk.f32.gmra.mrb[2].mxu0 %vm906_vm11, %v881_v26  ;;  %v831_v52 = vsel %vm826_vm7, %v814_v49, %v528_v23 }
  0xe0   :  { %417 = vrot.lane.b32.xlu0 %v1793_v11, %s1412_s21 }
  0xe1   :  { %v1801_v27 = vpop.permute.xlu1 %339 }
  0xe2   :  { %v1803_v29 = vpop.permute.xlu0 %277  ;;  %v782_v5 = vsel %vm775_vm4, %v765_v24, %v1801_v27 }
  0xe3   :  { %731 = vrot.lane.b32.xlu1 %v146_v58, %s1417_s15 }
  0xe4   :  { %669 = vrot.lane.b32.xlu0 %v131_v59, %s1416_s12  ;;  %v764_v59 = vsel %vm41_vm0, %v1608_v36, %v1741_v51 }
  0xe5   :  { %v592_v32 = vpop.permute.xlu1 %591  ;;  %v781_v60 = vsel %vm775_vm4, %v764_v59, %v1749_v56  ;;  %v165_v56 = vld [vmem:[#allocation2 + $0x120] sm:$0xff] }
  0xe6   :  { %v530_v33 = vpop.permute.xlu0 %529  ;;  %v848_v31 = vsel %vm843_vm8, %v831_v52, %v592_v32  ;;  %v798_v61 = vsel %vm792_vm5, %v781_v60, %v1762_v6 }
  0xe7   :  { %481 = vrot.lane.b32.xlu1 %v179_v30, %s1413_s24  ;;  %v815_v2 = vsel %vm809_vm6, %v798_v61, %v466_v19 }
  0xe8   :  { %291 = vrot.lane.b32.xlu0 %v179_v30, %s1411_s20  ;;  %v832_v36 = vsel %vm826_vm7, %v815_v2, %v530_v33 }
  0xe9   :  { %v1809_v34 = vpop.permute.xlu1 %403 }
  0xea   :  { %v1811_v35 = vpop.permute.xlu0 %341  ;;  %v799_v25 = vsel %vm792_vm5, %v782_v5, %v1809_v34  ;;  %v766_v34 = vsel %vm41_vm0, %v1640_v44, %v1803_v29 }
  0xeb   :  { %733 = vrot.lane.b32.xlu1 %v147_v4, %s1417_s15 }
  0xec   :  { %543 = vrot.lane.b32.xlu0 %v147_v4, %s1414_s25 }
  0xed   :  { %v656_v38 = vpop.permute.xlu1 %655 }
  0xee   :  { %v594_v41 = vpop.permute.xlu0 %593  ;;  %v865_v53 = vsel %vm860_vm9, %v848_v31, %v656_v38  ;;  %v783_v38 = vsel %vm775_vm4, %v766_v34, %v1811_v35 }
  0xef   :  { %355 = vrot.lane.b32.xlu1 %v148_v37, %s1410_s19  ;;  %v849_v51 = vsel %vm843_vm8, %v832_v36, %v594_v41 }
  0xf0   :  { %293 = vrot.lane.b32.xlu0 %v133_v16, %s1411_s20 }
  0xf1   :  { %v468_v47 = vpop.permute.xlu1 %467 }
  0xf2   :  { %v1824_v48 = vpop.permute.xlu0 %405 }
  0xf3   :  { %607 = vrot.lane.b32.xlu1 %v1793_v11, %s1415_s28  ;;  %v800_v41 = vsel %vm792_vm5, %v783_v38, %v1824_v48 }
  0xf4   :  { %545 = vrot.lane.b32.xlu0 %v148_v37, %s1414_s25 }
  0xf5   :  { %v720_v54 = vpop.permute.xlu1 %719 }
  0xf6   :  { %v658_v55 = vpop.permute.xlu0 %657  ;;  %v882_v58 = vsel %vm877_vm10, %v865_v53, %v720_v54 }
  0xf7   :  { %419 = vrot.lane.b32.xlu1 %v1832_v40, %s1412_s21  ;;  %1318 = vmatprep.mubr.msk.f32.mxu0 %vm906_vm11, %v882_v58  ;;  %v866_v3 = vsel %vm860_vm9, %v849_v51, %v658_v55  ;;  %v110_v58 = vld [vmem:[#allocation2 + $0xa0] sm:$0xff] }
  0xf8   :  { %357 = vrot.lane.b32.xlu0 %v149_v50, %s1410_s19 }
  0xf9   :  { %v470_v63 = vpop.permute.xlu1 %469 }
  0xfa   :  { %v1847_v1 = vpop.permute.xlu0 %279  ;;  %v817_v46 = vsel %vm809_vm6, %v800_v41, %v470_v63 }
  0xfb   :  { %671 = vrot.lane.b32.xlu1 %v179_v30, %s1416_s12  ;;  %v816_v30 = vsel %vm809_vm6, %v799_v25, %v468_v47  ;;  %v767_v61 = vsel %vm41_vm0, %v110_v58, %v1847_v1 }
  0xfc   :  { %609 = vrot.lane.b32.xlu0 %v1832_v40, %s1415_s28 }
  0xfd   :  { %v722_v7 = vpop.permute.xlu1 %721 }
  0xfe   :  { %v532_v8 = vpop.permute.xlu0 %531  ;;  %v883_v6 = vsel %vm877_vm10, %v866_v3, %v722_v7 }
  0xff   :  { %483 = vrot.lane.b32.xlu1 %v133_v16, %s1413_s24  ;;  %1319 = vmatmul.mubr.msk.f32.gmra.mrb[4].mxu0 %vm906_vm11, %v883_v6  ;;  %v833_v32 = vsel %vm826_vm7, %v816_v30, %v532_v8 }
 0x100   :  { %421 = vrot.lane.b32.xlu0 %v165_v56, %s1412_s21 }
 0x101   :  { %v344_v15 = vpop.permute.xlu1 %343 }
 0x102   :  { %v1860_v4 = vpop.permute.xlu0 %281  ;;  %v784_v63 = vsel %vm775_vm4, %v767_v61, %v344_v15 }
 0x103   :  { %735 = vrot.lane.b32.xlu1 %v148_v37, %s1417_s15  ;;  %v768_v1 = vsel %vm41_vm0, %v1666_v57, %v1860_v4 }
 0x104   :  { %673 = vrot.lane.b32.xlu0 %v133_v16, %s1416_s12 }
 0x105   :  { %v596_v10 = vpop.permute.xlu1 %595 }
 0x106   :  { %v534_v12 = vpop.permute.xlu0 %533  ;;  %v850_v39 = vsel %vm843_vm8, %v833_v32, %v596_v10 }
 0x107   :  { %547 = vrot.lane.b32.xlu1 %v149_v50, %s1414_s25  ;;  %v834_v47 = vsel %vm826_vm7, %v817_v46, %v534_v12 }
 0x108   :  { %485 = vrot.lane.b32.xlu0 %v181_v9, %s1413_s24 }
 0x109   :  { %v408_v14 = vpop.permute.xlu1 %407 }
 0x10a   :  { %v1866_v17 = vpop.permute.xlu0 %345  ;;  %v801_v2 = vsel %vm792_vm5, %v784_v63, %v408_v14 }
 0x10b   :  { %549 = vrot.lane.b32.xlu1 %v197_v13, %s1414_s25  ;;  %v785_v15 = vsel %vm775_vm4, %v768_v1, %v1866_v17 }
 0x10c   :  { %737 = vrot.lane.b32.xlu0 %v149_v50, %s1417_s15 }
 0x10d   :  { %v660_v19 = vpop.permute.xlu1 %659 }
 0x10e   :  { %v598_v21 = vpop.permute.xlu0 %597  ;;  %v867_v33 = vsel %vm860_vm9, %v850_v39, %v660_v19 }
 0x10f   :  { %613 = vrot.lane.b32.xlu1 %v214_v18, %s1415_s28  ;;  %v851_v44 = vsel %vm843_vm8, %v834_v47, %v598_v21 }
 0x110   :  { %611 = vrot.lane.b32.xlu0 %v165_v56, %s1415_s28 }
 0x111   :  { %v472_v23 = vpop.permute.xlu1 %471 }
 0x112   :  { %v410_v26 = vpop.permute.xlu0 %409  ;;  %v818_v56 = vsel %vm809_vm6, %v801_v2, %v472_v23 }
 0x113   :  { %677 = vrot.lane.b32.xlu1 %v230_v22, %s1416_s12  ;;  %v802_v12 = vsel %vm792_vm5, %v785_v15, %v410_v26 }
 0x114   :  { %675 = vrot.lane.b32.xlu0 %v181_v9, %s1416_s12 }
 0x115   :  { %v724_v27 = vpop.permute.xlu1 %723 }
 0x116   :  { %v662_v37 = vpop.permute.xlu0 %661  ;;  %v884_v16 = vsel %vm877_vm10, %v867_v33, %v724_v27 }
 0x117   :  { %741 = vrot.lane.b32.xlu1 %v246_v20, %s1417_s15  ;;  %1321 = vmatprep.mubr.msk.f32.mxu0 %vm906_vm11, %v884_v16  ;;  %v868_v29 = vsel %vm860_vm9, %v851_v44, %v662_v37 }
 0x118   :  { %739 = vrot.lane.b32.xlu0 %v197_v13, %s1417_s15 }
 0x119   :  { %v474_v42 = vpop.permute.xlu1 %473 }
 0x11a   :  { %v284_v43 = vpop.permute.xlu0 %283  ;;  %v819_v18 = vsel %vm809_vm6, %v802_v12, %v474_v42 }
 0x11b   :  { %v769_v20 = vsel %vm41_vm0, %v1677_v0, %v284_v43 }
 0x11d   :  { %v726_v49 = vpop.permute.xlu1 %725 }
 0x11e   :  { %v536_v52 = vpop.permute.xlu0 %535  ;;  %v885_v31 = vsel %vm877_vm10, %v868_v29, %v726_v49 }
 0x11f   :  { %1322 = vmatmul.mubr.msk.f32.gmra.mrb[6].mxu0 %vm906_vm11, %v885_v31  ;;  %v835_v3 = vsel %vm826_vm7, %v818_v56, %v536_v52 }
 0x121   :  { %v348_v35 = vpop.permute.xlu1 %347 }
 0x122   :  { %v286_v50 = vpop.permute.xlu0 %285  ;;  %v786_v33 = vsel %vm775_vm4, %v769_v20, %v348_v35 }
 0x123   :  { %v770_v0 = vsel %vm41_vm0, %v1709_v28, %v286_v50 }
 0x125   :  { %v600_v53 = vpop.permute.xlu1 %599 }
 0x126   :  { %v538_v48 = vpop.permute.xlu0 %537  ;;  %v852_v7 = vsel %vm843_vm8, %v835_v3, %v600_v53 }
 0x127   :  { %v836_v19 = vsel %vm826_vm7, %v819_v18, %v538_v48 }
 0x129   :  { %v412_v54 = vpop.permute.xlu1 %411 }
 0x12a   :  { %v350_v55 = vpop.permute.xlu0 %349  ;;  %v803_v27 = vsel %vm792_vm5, %v786_v33, %v412_v54 }
 0x12b   :  { %v787_v43 = vsel %vm775_vm4, %v770_v0, %v350_v55 }
 0x12d   :  { %v664_v59 = vpop.permute.xlu1 %663 }
 0x12e   :  { %v602_v60 = vpop.permute.xlu0 %601  ;;  %v869_v8 = vsel %vm860_vm9, %v852_v7, %v664_v59 }
 0x12f   :  { %v853_v21 = vsel %vm843_vm8, %v836_v19, %v602_v60 }
 0x131   :  { %v476_v36 = vpop.permute.xlu1 %475 }
 0x132   :  { %v414_v51 = vpop.permute.xlu0 %413  ;;  %v820_v34 = vsel %vm809_vm6, %v803_v27, %v476_v36 }
 0x133   :  { %v804_v29 = vsel %vm792_vm5, %v787_v43, %v414_v51 }
 0x135   :  { %v728_v6 = vpop.permute.xlu1 %727 }
 0x136   :  { %v666_v9 = vpop.permute.xlu0 %665  ;;  %v886_v10 = vsel %vm877_vm10, %v869_v8, %v728_v6 }
 0x137   :  { %1324 = vmatprep.mubr.msk.f32.mxu1 %vm906_vm11, %v886_v10  ;;  %v870_v24 = vsel %vm860_vm9, %v853_v21, %v666_v9 }
 0x139   :  { %v478_v13 = vpop.permute.xlu1 %477 }
 0x13a   :  { %v288_v14 = vpop.permute.xlu0 %287  ;;  %v821_v31 = vsel %vm809_vm6, %v804_v29, %v478_v13  ;;  %v1987_v29 = vld [vmem:[%s2189_s2] ss:$0 sm:$0xff]  ;;  %s1418_s2 = smov [#allocation3]  }
 0x13b   :  { %v771_v51 = vsel %vm41_vm0, %v1731_v45, %v288_v14  ;;  %s1239_s26 = sshll.u32 %s1418_s2, 4  ;;  %s1240_s26 = int_to_ptr.vmem [resolvable:$true] %s1239_s26 }
 0x13c   :  { %s1365_s27 = scalar_lea.vmem %s1240_s26, 32  ;;  %p1366_p1 = scmp.lt.s32.totalorder %s1240_s26, %s1240_s26 }
 0x13d   :  { %v730_v5 = vpop.permute.xlu1 %729 }
 0x13e   :  { %v540_v22 = vpop.permute.xlu0 %539  ;;  %v887_v57 = vsel %vm877_vm10, %v870_v24, %v730_v5 }
 0x13f   :  { %1325 = vmatmul.mubr.msk.f32.vlgmr.msra.gmra.mrb[0].mxu1 %vm906_vm11, %v887_v57  ;;  %v837_v38 = vsel %vm826_vm7, %v820_v34, %v540_v22 }
 0x141   :  { %v352_v4 = vpop.permute.xlu1 %351 }
 0x142   :  { %v290_v17 = vpop.permute.xlu0 %289  ;;  %v788_v56 = vsel %vm775_vm4, %v771_v51, %v352_v4 }
 0x143   :  { %v772_v45 = vsel %vm41_vm0, %v1770_v62, %v290_v17 }
 0x145   :  { %v604_v25 = vpop.permute.xlu1 %603 }
 0x146   :  { %v542_v23 = vpop.permute.xlu0 %541  ;;  %v854_v41 = vsel %vm843_vm8, %v837_v38, %v604_v25 }
 0x147   :  { %v838_v35 = vsel %vm826_vm7, %v821_v31, %v542_v23 }
 0x149   :  { %v416_v26 = vpop.permute.xlu1 %415 }
 0x14a   :  { %v354_v30 = vpop.permute.xlu0 %353  ;;  %v805_v3 = vsel %vm792_vm5, %v788_v56, %v416_v26 }
 0x14b   :  { %v789_v14 = vsel %vm775_vm4, %v772_v45, %v354_v30 }
 0x14d   :  { %v668_v32 = vpop.permute.xlu1 %667 }
 0x14e   :  { %v606_v39 = vpop.permute.xlu0 %605  ;;  %v871_v42 = vsel %vm860_vm9, %v854_v41, %v668_v32 }
 0x14f   :  { %v855_v53 = vsel %vm843_vm8, %v838_v35, %v606_v39 }
 0x151   :  { %v480_v37 = vpop.permute.xlu1 %479 }
 0x152   :  { %v418_v16 = vpop.permute.xlu0 %417  ;;  %v822_v6 = vsel %vm809_vm6, %v805_v3, %v480_v37 }
 0x153   :  { %v806_v18 = vsel %vm792_vm5, %v789_v14, %v418_v16 }
 0x155   :  { %v732_v46 = vpop.permute.xlu1 %731 }
 0x156   :  { %v670_v47 = vpop.permute.xlu0 %669  ;;  %v888_v44 = vsel %vm877_vm10, %v871_v42, %v732_v46 }
 0x157   :  { %1327 = vmatprep.mubr.msk.f32.mxu1 %vm906_vm11, %v888_v44  ;;  %v872_v48 = vsel %vm860_vm9, %v855_v53, %v670_v47 }
 0x159   :  { %v482_v49 = vpop.permute.xlu1 %481 }
 0x15a   :  { %v292_v52 = vpop.permute.xlu0 %291  ;;  %v823_v24 = vsel %vm809_vm6, %v806_v18, %v482_v49 }
 0x15b   :  { %v773_v26 = vsel %vm41_vm0, %v1793_v11, %v292_v52 }
 0x15d   :  { %v734_v54 = vpop.permute.xlu1 %733 }
 0x15e   :  { %v544_v58 = vpop.permute.xlu0 %543  ;;  %v889_v28 = vsel %vm877_vm10, %v872_v48, %v734_v54 }
 0x15f   :  { %1328 = vmatmul.mubr.msk.f32.gmra.mrb[2].mxu1 %vm906_vm11, %v889_v28  ;;  %v839_v9 = vsel %vm826_vm7, %v822_v6, %v544_v58 }
 0x161   :  { %v356_v50 = vpop.permute.xlu1 %355 }
 0x162   :  { %v294_v55 = vpop.permute.xlu0 %293  ;;  %v790_v32 = vsel %vm775_vm4, %v773_v26, %v356_v50 }
 0x163   :  { %v774_v30 = vsel %vm41_vm0, %v1832_v40, %v294_v55 }
 0x165   :  { %v608_v59 = vpop.permute.xlu1 %607 }
 0x166   :  { %v546_v60 = vpop.permute.xlu0 %545  ;;  %v856_v10 = vsel %vm843_vm8, %v839_v9, %v608_v59 }
 0x167   :  { %v840_v5 = vsel %vm826_vm7, %v823_v24, %v546_v60 }
 0x169   :  { %v420_v61 = vpop.permute.xlu1 %419 }
 0x16a   :  { %v358_v63 = vpop.permute.xlu0 %357  ;;  %v807_v20 = vsel %vm792_vm5, %v790_v32, %v420_v61 }
 0x16b   :  { %v791_v39 = vsel %vm775_vm4, %v774_v30, %v358_v63 }
 0x16d   :  { %v672_v2 = vpop.permute.xlu1 %671 }
 0x16e   :  { %v610_v36 = vpop.permute.xlu0 %609  ;;  %v873_v1 = vsel %vm860_vm9, %v856_v10, %v672_v2 }
 0x16f   :  { %v857_v22 = vsel %vm843_vm8, %v840_v5, %v610_v36 }
 0x171   :  { %v484_v7 = vpop.permute.xlu1 %483 }
 0x172   :  { %v422_v8 = vpop.permute.xlu0 %421  ;;  %v824_v16 = vsel %vm809_vm6, %v807_v20, %v484_v7 }
 0x173   :  { %v808_v33 = vsel %vm792_vm5, %v791_v39, %v422_v8 }
 0x175   :  { %v736_v15 = vpop.permute.xlu1 %735 }
 0x176   :  { %v674_v12 = vpop.permute.xlu0 %673  ;;  %v890_v13 = vsel %vm877_vm10, %v873_v1, %v736_v15 }
 0x177   :  { %1330 = vmatprep.mubr.msk.f32.mxu1 %vm906_vm11, %v890_v13  ;;  %v874_v57 = vsel %vm860_vm9, %v857_v22, %v674_v12 }
 0x179   :  { %v548_v19 = vpop.permute.xlu1 %547 }
 0x17a   :  { %v486_v21 = vpop.permute.xlu0 %485  ;;  %v841_v38 = vsel %vm826_vm7, %v824_v16, %v548_v19 }
 0x17b   :  { %v825_v34 = vsel %vm809_vm6, %v808_v33, %v486_v21 }
 0x17d   :  { %v550_v4 = vpop.permute.xlu1 %549 }
 0x17e   :  { %v738_v25 = vpop.permute.xlu0 %737  ;;  %v842_v11 = vsel %vm826_vm7, %v825_v34, %v550_v4 }
 0x17f   :  { %v891_v62 = vsel %vm877_vm10, %v874_v57, %v738_v25 }
 0x180   :  { %1331 = vmatmul.mubr.msk.f32.gmra.mrb[4].mxu1 %vm906_vm11, %v891_v62 }
 0x181   :  { %v614_v17 = vpop.permute.xlu1 %613 }
 0x182   :  { %v612_v23 = vpop.permute.xlu0 %611  ;;  %v859_v40 = vsel %vm843_vm8, %v842_v11, %v614_v17 }
 0x183   :  { %v858_v41 = vsel %vm843_vm8, %v841_v38, %v612_v23 }
 0x185   :  { %v678_v27 = vpop.permute.xlu1 %677 }
 0x186   :  { %v676_v37 = vpop.permute.xlu0 %675  ;;  %v876_v42 = vsel %vm860_vm9, %v859_v40, %v678_v27 }
 0x187   :  { %v875_v46 = vsel %vm860_vm9, %v858_v41, %v676_v37 }
 0x189   :  { %v742_v47 = vpop.permute.xlu1 %741 }
 0x18a   :  { %v740_v44 = vpop.permute.xlu0 %739  ;;  %v893_v0 = vsel %vm877_vm10, %v876_v42, %v742_v47 }
 0x18b   :  { %v892_v43 = vsel %vm877_vm10, %v875_v46, %v740_v44 }
 0x18c   :  { %1333 = vmatprep.mubr.msk.f32.mxu1 %vm906_vm11, %v892_v43 }
 0x18d   :  { %1334 = vmatmul.mubr.msk.f32.gmra.mrb[6].mxu1 %vm906_vm11, %v893_v0 }
 0x192   :  { %v1314_v49 = vpop.f32.mrb[0].mxu0 }
 0x193   :  { %v1990_v52 = vadd.f32 %v1314_v49, %v1987_v29  ;;  %v1025_v31 = vpop.f32.mrb[1].mxu0 }
 0x194   :  { %v1993_v35 = vadd.f32 %v1987_v29, %v1025_v31 }
 0x195   :  { %1216 = vst.msk [vmem:[%s2192_s5 + $0x8] sm:$0xff] %vm775_vm4, %v1990_v52  ;;  %v1105_v9 = vsel %vm775_vm4, %v1990_v52, 0.0 }
 0x196   :  { %1215 = vst.msk [vmem:[%s2192_s5] sm:$0xff] %vm775_vm4, %v1993_v35  ;;  %v1104_v10 = vsel %vm775_vm4, %v1993_v35, 0.0 }
 0x197   :  { %v1106_v12 = vadd.f32 %v1105_v9, %v1104_v10 }
 0x1b2   :  { %v1317_v53 = vpop.f32.mrb[2].mxu0 }
 0x1b3   :  { %v2006_v48 = vadd.f32 %v1317_v53, %v1987_v29  ;;  %v1035_v54 = vpop.f32.mrb[3].mxu0 }
 0x1b4   :  { %v2009_v58 = vadd.f32 %v1987_v29, %v1035_v54 }
 0x1b5   :  { %1218 = vst.msk [vmem:[%s2192_s5 + $0x18] sm:$0xff] %vm775_vm4, %v2006_v48  ;;  %v1109_v45 = vsel %vm775_vm4, %v2006_v48, 0.0 }
 0x1b6   :  { %1217 = vst.msk [vmem:[%s2192_s5 + $0x10] sm:$0xff] %vm775_vm4, %v2009_v58  ;;  %v1107_v15 = vsel %vm775_vm4, %v2009_v58, 0.0 }
 0x1b7   :  { %v1108_v13 = vadd.f32 %v1107_v15, %v1106_v12 }
 0x1b9   :  { %v1110_v18 = vadd.f32 %v1109_v45, %v1108_v13 }
 0x1d2   :  { %v1320_v28 = vpop.f32.mrb[4].mxu0 }
 0x1d3   :  { %v2022_v50 = vadd.f32 %v1320_v28, %v1987_v29  ;;  %v1045_v55 = vpop.f32.mrb[5].mxu0 }
 0x1d4   :  { %v2025_v59 = vadd.f32 %v1987_v29, %v1045_v55 }
 0x1d5   :  { %1220 = vst.msk [vmem:[%s2192_s5 + $0x28] sm:$0xff] %vm775_vm4, %v2022_v50  ;;  %v1113_v21 = vsel %vm775_vm4, %v2022_v50, 0.0 }
 0x1d6   :  { %1219 = vst.msk [vmem:[%s2192_s5 + $0x20] sm:$0xff] %vm775_vm4, %v2025_v59  ;;  %v1111_v14 = vsel %vm775_vm4, %v2025_v59, 0.0 }
 0x1d7   :  { %v1112_v19 = vadd.f32 %v1111_v14, %v1110_v18 }
 0x1d9   :  { %v1114_v5 = vadd.f32 %v1113_v21, %v1112_v19 }
 0x1f2   :  { %v1323_v60 = vpop.f32.mrb[6].mxu0 }
 0x1f3   :  { %v2038_v61 = vadd.f32 %v1323_v60, %v1987_v29  ;;  %v1055_v63 = vpop.f32.mrb[7].mxu0 }
 0x1f4   :  { %v2041_v2 = vadd.f32 %v1987_v29, %v1055_v63 }
 0x1f5   :  { %1222 = vst.msk [vmem:[%s2192_s5 + $0x38] sm:$0xff] %vm775_vm4, %v2038_v61  ;;  %v1117_v57 = vsel %vm775_vm4, %v2038_v61, 0.0 }
 0x1f6   :  { %1221 = vst.msk [vmem:[%s2192_s5 + $0x30] sm:$0xff] %vm775_vm4, %v2041_v2  ;;  %v1115_v24 = vsel %vm775_vm4, %v2041_v2, 0.0 }
 0x1f7   :  { %v1116_v22 = vadd.f32 %v1115_v24, %v1114_v5 }
 0x1f9   :  { %v1118_v25 = vadd.f32 %v1117_v57, %v1116_v22 }
 0x212   :  { %v1326_v36 = vpop.f32.mrb[0].mxu1 }
 0x213   :  { %v2054_v51 = vadd.f32 %v1326_v36, %v1987_v29  ;;  %v1065_v56 = vpop.f32.mrb[1].mxu1 }
 0x214   :  { %v2057_v3 = vadd.f32 %v1987_v29, %v1065_v56 }
 0x215   :  { %1224 = vst.msk [vmem:[%s2192_s5 + $0x48] sm:$0xff] %vm775_vm4, %v2054_v51  ;;  %v1121_v17 = vsel %vm775_vm4, %v2054_v51, 0.0 }
 0x216   :  { %1223 = vst.msk [vmem:[%s2192_s5 + $0x40] sm:$0xff] %vm775_vm4, %v2057_v3  ;;  %v1119_v4 = vsel %vm775_vm4, %v2057_v3, 0.0 }
 0x217   :  { %v1120_v62 = vadd.f32 %v1119_v4, %v1118_v25 }
 0x219   :  { %v1122_v26 = vadd.f32 %v1121_v17, %v1120_v62 }
 0x232   :  { %v1329_v7 = vpop.f32.mrb[2].mxu1 }
 0x233   :  { %v2070_v8 = vadd.f32 %v1329_v7, %v1987_v29  ;;  %v1075_v6 = vpop.f32.mrb[3].mxu1 }
 0x234   :  { %v2077_v1 = vadd.f32 %v1987_v29, %v1075_v6 }
 0x235   :  { %1226 = vst.msk [vmem:[%s2192_s5 + $0x58] sm:$0xff] %vm775_vm4, %v2070_v8  ;;  %v1125_v33 = vsel %vm775_vm4, %v2070_v8, 0.0 }
 0x236   :  { %1225 = vst.msk [vmem:[%s2192_s5 + $0x50] sm:$0xff] %vm775_vm4, %v2077_v1  ;;  %v1123_v23 = vsel %vm775_vm4, %v2077_v1, 0.0 }
 0x237   :  { %v1124_v30 = vadd.f32 %v1123_v23, %v1122_v26 }
 0x239   :  { %v1126_v37 = vadd.f32 %v1125_v33, %v1124_v30 }
 0x253   :  { %v1332_v32 = vpop.f32.mrb[4].mxu1 }
 0x254   :  { %v1091_v39 = vadd.f32 %v1332_v32, %v1987_v29  ;;  %v1085_v20 = vpop.f32.mrb[5].mxu1 }
 0x255   :  { %v1086_v27 = vadd.f32 %v1987_v29, %v1085_v20 }
 0x256   :  { %1228 = vst.msk [vmem:[%s2192_s5 + $0x68] sm:$0xff] %vm775_vm4, %v1091_v39  ;;  %v1129_v38 = vsel %vm775_vm4, %v1091_v39, 0.0 }
 0x257   :  { %v1127_v16 = vsel %vm775_vm4, %v1086_v27, 0.0  ;;  %1227 = vst.msk [vmem:[%s2192_s5 + $0x60] sm:$0xff] %vm775_vm4, %v1086_v27 }
 0x258   :  { %v1128_v34 = vadd.f32 %v1127_v16, %v1126_v37 }
 0x25a   :  { %v1130_v11 = vadd.f32 %v1129_v38, %v1128_v34 }
 0x260   :  { %v1335_v40 = vpop.f32.mrb[6].mxu1 }
 0x261   :  { %v1101_v41 = vadd.f32 %v1335_v40, %v1987_v29  ;;  %v1095_v42 = vpop.f32.mrb[7].mxu1 }
 0x262   :  { %v1096_v46 = vadd.f32 %v1987_v29, %v1095_v42 }
 0x263   :  { %1230 = vst.msk [vmem:[%s2192_s5 + $0x78] sm:$0xff] %vm775_vm4, %v1101_v41  ;;  %v1133_v0 = vsel %vm775_vm4, %v1101_v41, 0.0 }
 0x264   :  { %v1131_v47 = vsel %vm775_vm4, %v1096_v46, 0.0  ;;  %1229 = vst.msk [vmem:[%s2192_s5 + $0x70] sm:$0xff] %vm775_vm4, %v1096_v46  ;;  %s1361_s5 = scalar_lea.vmem %s1240_s26, 16 }
 0x265   :  { %v1132_v44 = vadd.f32 %v1131_v47, %v1130_v11  ;;  %p1362_p0 = scmp.ne.s32.totalorder %s1240_s26, %s1361_s5  ;;  %p1367_p2 = scmp.lt.s32.totalorder %s1365_s27, %s1361_s5 }
 0x267   :  { %v1134_v43 = vadd.f32 %v1133_v0, %v1132_v44  ;;  %p1368_p3 = por %p1367_p2, %p1366_p1 }
 0x269   :  { %v1135_v49 = vrot.slane %v1134_v43, 4  ;;  %p1369_p4 = pnand %p1368_p3, %p1362_p0 }
 0x26b   :  { %v1136_v31 = vadd.f32 %v1135_v49, %v1134_v43 }
 0x26d   :  { %v1137_v53 = vrot.slane %v1136_v31, 2 }
 0x26f   :  { %v1138_v29 = vadd.f32 %v1137_v53, %v1136_v31 }
 0x271   :  { %v1139_v54 = vrot.slane %v1138_v29, 1 }
 0x273   :  { %v1140_v28 = vadd.f32 %v1139_v54, %v1138_v29 }
 0x275   :  { %v1141_v55 = vmul.f32 0.0078125, %v1140_v28 }
 0x277   :  { %v1142_v60 = vsub.f32 %v1993_v35, %v1141_v55  ;;  %v1143_v63 = vsub.f32 %v1990_v52, %v1141_v55  ;;  %1159 = vst.msk [vmem:[#allocation3] sm:$0x1] %vm1158_vm12, %v1141_v55  ;;  %v1144_v36 = vsub.f32 %v2009_v58, %v1141_v55 }
 0x278   :  { %1372 = shalt.err (!%p1369_p4)
}
 0x279   :  { %s1373_s30 = scalar_lea.hbm %s2193_s6, 16 }
 0x27a   :  { %p1374_p5 = scmp.ne.s32.totalorder %s2193_s6, %s1373_s30  ;;  %p1377_p6 = scmp.lt.u32.totalorder %s1373_s30, %s2193_s6 }
 0x27c   :  { %p1379_p7 = pnand %p1377_p6, %p1374_p5 }
 0x27e   :  { %1382 = shalt.err (!%p1379_p7)
}
 0x27f   :  { %1242 = dma.vmem_to_hbm [thread:$0]  %s1240_s26, 16, %s2193_s6, [#allocation4]   ;;  %v1145_v52 = vsub.f32 %v2006_v48, %v1141_v55  ;;  %v1154_v35 = vsub.f32 %v1086_v27, %v1141_v55  ;;  %v1155_v58 = vsub.f32 %v1091_v39, %v1141_v55  ;;  %v1156_v56 = vsub.f32 %v1096_v46, %v1141_v55 }
 0x280   :  { %v1160_v7 = vmul.f32 %v1142_v60, %v1142_v60  ;;  %v1161_v6 = vmul.f32 %v1143_v63, %v1143_v63  ;;  %v1146_v9 = vsub.f32 %v2025_v59, %v1141_v55  ;;  %v1162_v10 = vmul.f32 %v1144_v36, %v1144_v36  ;;  %s1419_s6 = smov [#allocation5]  }
 0x281   :  { %v1147_v15 = vsub.f32 %v2022_v50, %v1141_v55  ;;  %v1163_v12 = vmul.f32 %v1145_v52, %v1145_v52  ;;  %v1148_v18 = vsub.f32 %v2041_v2, %v1141_v55  ;;  %v1149_v24 = vsub.f32 %v2038_v61, %v1141_v55  ;;  %s1249_s14 = sshll.u32 %s1419_s6, 4  ;;  %s1250_s14 = int_to_ptr.vmem [resolvable:$true] %s1249_s14 }
 0x282   :  { %v1176_v13 = vsel %vm775_vm4, %v1160_v7, 0.0  ;;  %v1177_v45 = vsel %vm775_vm4, %v1161_v6, 0.0  ;;  %v1164_v19 = vmul.f32 %v1146_v9, %v1146_v9  ;;  %v1179_v48 = vsel %vm775_vm4, %v1162_v10, 0.0  ;;  %s1383_s15 = scalar_lea.vmem %s1250_s14, 16  ;;  %s1387_s1 = scalar_lea.vmem %s1250_s14, 32 }
 0x283   :  { %v1178_v14 = vadd.f32 %v1177_v45, %v1176_v13  ;;  %v1165_v5 = vmul.f32 %v1147_v15, %v1147_v15  ;;  %v1181_v59 = vsel %vm775_vm4, %v1163_v12, 0.0  ;;  %v1157_v22 = vsub.f32 %v1101_v41, %v1141_v55  ;;  %p1384_p8 = scmp.ne.s32.totalorder %s1250_s14, %s1383_s15  ;;  %p1388_p9 = scmp.lt.s32.totalorder %s1250_s14, %s1250_s14 }
 0x284   :  { %v1150_v50 = vsub.f32 %v2057_v3, %v1141_v55  ;;  %v1166_v4 = vmul.f32 %v1148_v18, %v1148_v18  ;;  %v1183_v25 = vsel %vm775_vm4, %v1164_v19, 0.0  ;;  %v1151_v17 = vsub.f32 %v2054_v51, %v1141_v55  ;;  %p1389_p10 = scmp.lt.s32.totalorder %s1387_s1, %s1383_s15 }
 0x285   :  { %v1180_v21 = vadd.f32 %v1179_v48, %v1178_v14  ;;  %v1167_v2 = vmul.f32 %v1149_v24, %v1149_v24  ;;  %v1185_v23 = vsel %vm775_vm4, %v1165_v5, 0.0  ;;  %v1152_v30 = vsub.f32 %v2077_v1, %v1141_v55 }
 0x286   :  { %v1168_v61 = vmul.f32 %v1150_v50, %v1150_v50  ;;  %v1187_v32 = vsel %vm775_vm4, %v1166_v4, 0.0  ;;  %v1153_v20 = vsub.f32 %v2070_v8, %v1141_v55  ;;  %v1169_v33 = vmul.f32 %v1151_v17, %v1151_v17  ;;  %p1390_p11 = por %p1389_p10, %p1388_p9 }
 0x287   :  { %v1182_v57 = vadd.f32 %v1181_v59, %v1180_v21  ;;  %v1189_v3 = vsel %vm775_vm4, %v1167_v2, 0.0  ;;  %v1170_v37 = vmul.f32 %v1152_v30, %v1152_v30  ;;  %v1172_v40 = vmul.f32 %v1154_v35, %v1154_v35 }
 0x288   :  { %v1191_v16 = vsel %vm775_vm4, %v1168_v61, 0.0  ;;  %v1171_v34 = vmul.f32 %v1153_v20, %v1153_v20  ;;  %v1193_v38 = vsel %vm775_vm4, %v1169_v33, 0.0  ;;  %v1173_v42 = vmul.f32 %v1155_v58, %v1155_v58  ;;  %p1391_p12 = pnand %p1390_p11, %p1384_p8 }
 0x289   :  { %v1184_v62 = vadd.f32 %v1183_v25, %v1182_v57  ;;  %v1195_v1 = vsel %vm775_vm4, %v1170_v37, 0.0  ;;  %v1174_v47 = vmul.f32 %v1156_v56, %v1156_v56  ;;  %v1199_v44 = vsel %vm775_vm4, %v1172_v40, 0.0 }
 0x28a   :  { %v1197_v46 = vsel %vm775_vm4, %v1171_v34, 0.0  ;;  %v1201_v43 = vsel %vm775_vm4, %v1173_v42, 0.0  ;;  %v1175_v49 = vmul.f32 %v1157_v22, %v1157_v22 }
 0x28b   :  { %v1186_v26 = vadd.f32 %v1185_v23, %v1184_v62  ;;  %v1203_v53 = vsel %vm775_vm4, %v1174_v47, 0.0 }
 0x28c   :  { %v1205_v54 = vsel %vm775_vm4, %v1175_v49, 0.0 }
 0x28d   :  { %v1188_v39 = vadd.f32 %v1187_v32, %v1186_v26 }
 0x28f   :  { %v1190_v27 = vadd.f32 %v1189_v3, %v1188_v39 }
 0x291   :  { %v1192_v51 = vadd.f32 %v1191_v16, %v1190_v27 }
 0x293   :  { %v1194_v11 = vadd.f32 %v1193_v38, %v1192_v51 }
 0x295   :  { %v1196_v41 = vadd.f32 %v1195_v1, %v1194_v11 }
 0x297   :  { %v1198_v8 = vadd.f32 %v1197_v46, %v1196_v41 }
 0x299   :  { %v1200_v0 = vadd.f32 %v1199_v44, %v1198_v8 }
 0x29b   :  { %v1202_v31 = vadd.f32 %v1201_v43, %v1200_v0 }
 0x29d   :  { %v1204_v29 = vadd.f32 %v1203_v53, %v1202_v31 }
 0x29f   :  { %v1206_v28 = vadd.f32 %v1205_v54, %v1204_v29 }
 0x2a1   :  { %v1207_v55 = vrot.slane %v1206_v28, 4 }
 0x2a3   :  { %v1208_v60 = vadd.f32 %v1207_v55, %v1206_v28 }
 0x2a5   :  { %v1209_v63 = vrot.slane %v1208_v60, 2 }
 0x2a7   :  { %v1210_v36 = vadd.f32 %v1209_v63, %v1208_v60 }
 0x2a9   :  { %v1211_v52 = vrot.slane %v1210_v36, 1 }
 0x2ab   :  { %v1212_v35 = vadd.f32 %v1211_v52, %v1210_v36 }
 0x2ad   :  { %v1213_v58 = vmul.f32 0.0078125, %v1212_v35 }
 0x2af   :  { %1214 = vst.msk [vmem:[#allocation5] sm:$0x1] %vm1158_vm12, %v1213_v58 }
 0x2b0   :  { %1394 = shalt.err (!%p1391_p12)
}
 0x2b1   :  { %s1395_s18 = scalar_lea.hbm %s2194_s7, 16 }
 0x2b2   :  { %p1396_p13 = scmp.ne.s32.totalorder %s2194_s7, %s1395_s18  ;;  %p1399_p0 = scmp.lt.u32.totalorder %s1395_s18, %s2194_s7 }
 0x2b4   :  { %p1401_p1 = pnand %p1399_p0, %p1396_p13 }
 0x2b6   :  { %1404 = shalt.err (!%p1401_p1)
}
 0x2b7   :  { %1252 = dma.vmem_to_hbm [thread:$0]  %s1250_s14, 16, %s2194_s7, [#allocation6]  }
 0x2b8   :  { %1405 = dma.done.wait [#allocation4], 16  }
 0x2b9   :  { %1406 = vsyncadd [#allocation4], 4294967280 }
 0x2ba   :  { %1407 = dma.done.wait [#allocation6], 16  }
 0x2bb   :  { %1408 = vsyncadd [#allocation6], 4294967280 }
 0x2bc   :  { %1261 = vsyncpa [#allocation4], 1 }
 0x2bd   :  { %1262 = vsyncpa [#allocation6], 1 }

</bundles_post_ra>
